<compile_context>
chip_gen: v5e
topology: v5e:2x2
jax: 0.10.0
libtpu: 0.0.40
codegen_flags: <defaults>
</compile_context>

<pallas_src>
import functools

import jax
import jax.numpy as jnp
from jax.experimental import pallas as pl
from jax.experimental.pallas import tpu as pltpu


def _abmil_kernel(x_ref, wvu_ref, bvu_ref, ww_ref, w1_ref, b1_ref, w2_ref, b2_ref,
                  out_ref, m_sc, l_sc, acc_sc, *, bf16_pool):
    """Grid = (bag_tiles, instance_tiles); instance axis = online-softmax reduction."""
    tb, tn, d = x_ref.shape
    lp = ww_ref.shape[-1]                       # padded gate width (multiple of 128)
    nj = pl.program_id(1)

    @pl.when(nj == 0)
    def _init():
        m_sc[...] = jnp.full(m_sc.shape, -jnp.inf, dtype=jnp.float32)
        l_sc[...] = jnp.zeros(l_sc.shape, dtype=jnp.float32)
        acc_sc[...] = jnp.zeros(acc_sc.shape, dtype=jnp.float32)

    x = x_ref[...]                                                      # (tb, tn, d) bf16

    # Fused gate projection: one MXU matmul for both tanh & sigmoid branches.
    g = jnp.dot(x.reshape(tb * tn, d), wvu_ref[...],
                preferred_element_type=jnp.float32) + bvu_ref[...]      # (tb*tn, 2*lp) f32
    # lp is a multiple of 128 -> both slices are lane-tile-aligned free views.
    gated = jnp.tanh(g[:, :lp]) * jax.nn.sigmoid(g[:, lp:])             # (tb*tn, lp) f32

    # Attention scores via a lane reduction (bw dropped: it cancels exactly under softmax).
    scores = jnp.sum(gated.reshape(tb, tn, lp) * ww_ref[...], axis=-1)  # (tb, tn) f32

    # Online softmax over the tiled instance axis.
    m_prev = m_sc[...]                                                  # (tb, 1)
    m_new = jnp.maximum(m_prev, jnp.max(scores, axis=-1, keepdims=True))
    alpha = jnp.exp(m_prev - m_new)
    p = jnp.exp(scores - m_new)                                         # (tb, tn) f32
    l_sc[...] = alpha * l_sc[...] + jnp.sum(p, axis=-1, keepdims=True)

    # Unnormalized attention-weighted bag feature (VPU multiply + sublane reduce).
    if bf16_pool:
        prod = p.astype(x.dtype)[:, :, None] * x                        # bf16 multiply
        contrib = jnp.sum(prod, axis=1, dtype=jnp.float32)              # f32 accumulate
    else:
        contrib = jnp.sum(p[:, :, None] * x.astype(jnp.float32), axis=1)
    acc_sc[...] = alpha * acc_sc[...] + contrib                         # (tb, d) f32
    m_sc[...] = m_new

    @pl.when(nj == pl.num_programs(1) - 1)
    def _finalize():
        feat = acc_sc[...] / l_sc[...]                                  # exact normalization
        h = jnp.dot(feat.astype(w1_ref.dtype), w1_ref[...],
                    preferred_element_type=jnp.float32) + b1_ref[...]   # (tb, H) f32
        h = jnp.maximum(h, 0.0)
        logits = jnp.sum(h * w2_ref[...], axis=-1, keepdims=True) + b2_ref[0]
        out_ref[...] = logits.reshape(tb, 1, 1).astype(out_ref.dtype)


def _device_config():
    """Return (vmem_budget_bytes, vmem_limit_bytes_or_None, use_bf16_pooling_mul)."""
    kind = ""
    try:
        kind = jax.devices()[0].device_kind.lower()
    except Exception:
        pass
    if "v7" in kind or "7x" in kind:
        return 40 << 20, 56 << 20, True    # v7x: 64 MiB VMEM / TC, bf16 VALU
    if "v6" in kind:
        return 80 << 20, 100 << 20, True   # v6e: 128 MiB VMEM, bf16 VALU/EUP
    if "v5" in kind:
        return 80 << 20, 100 << 20, False  # v5e: 128 MiB VMEM, no bf16 VALU -> keep f32
    return 12 << 20, None, False           # unknown chip: stay inside default scoped VMEM


def _divisors_desc(n, cap, multiple):
    """Divisors of n, descending, <= cap, each a multiple of `multiple` or == n."""
    out = []
    for t in range(min(n, cap), 0, -1):
        if n % t == 0 and (t % multiple == 0 or t == n):
            out.append(t)
    return out or [n]


def _vmem_estimate(tb, tn, d, l2p, h, bf16_pool, single_buf_weights):
    f32, bf16 = 4, 2
    x_tile = tb * tn * d * bf16 * 2                       # streamed x, double-buffered
    wbuf = 1 if single_buf_weights else 2
    weights = (d * l2p + d * h) * bf16 * wbuf             # wvu + w1
    rows = (l2p + l2p // 2 + 2 * h) * f32 * wbuf          # bvu, ww_row, b1, w2_row
    g = tb * tn * l2p * f32                               # fused gate pre-activation
    gated = tb * tn * (l2p // 2) * f32
    pool = tb * tn * d * (bf16 if bf16_pool else f32)     # p[:, :, None] * x product
    scratch = tb * d * f32 + tb * 8 * f32
    return x_tile + weights + rows + g + gated + pool + scratch + (2 << 20)


def _select_tiles(B, N, D, l2p, H, vmem_budget, *, max_bag_tile, max_inst_tile,
                  bf16_pool, single_buf_weights):
    # Cap TB at B // 2 so the bag ("parallel") axis has >= 2 tiles for v7x's two cores.
    # TODO(synk): if B == 1 the second v7x core idles; a cross-core instance split with a
    #             second-stage combine is not implemented.
    tb_cap = max(1, min(max_bag_tile, B // 2)) if B >= 2 else 1
    tb_cands = _divisors_desc(B, tb_cap, 1)
    tn_cands = _divisors_desc(N, max_inst_tile, 8)        # sublane multiple (or full axis)
    for tn in tn_cands:                                   # maximize instance tile first
        for tb in tb_cands:
            if _vmem_estimate(tb, tn, D, l2p, H, bf16_pool, single_buf_weights) <= vmem_budget:
                return tb, tn
    # TODO(synk): pathological shapes (e.g. prime N) fall back to the smallest divisor
    #             tiles; padding+masking is not implemented.
    return tb_cands[-1], tn_cands[-1]


def prepare_params(params, *, compute_dtype=jnp.bfloat16):
    """One-time host-side weight prep: fuse gate branches, pad lanes, transpose, cast."""
    wv, bv, wu, bu, ww, bw, w1, b1, w2, b2 = params
    L = wv.shape[1]
    Lp = ((L + 127) // 128) * 128                         # lane-tile-aligned gate width

    def pad_l(a):
        return jnp.pad(a, [(0, 0)] * (a.ndim - 1) + [(0, Lp - L)])

    return dict(
        wvu=jnp.concatenate([pad_l(wv), pad_l(wu)], axis=1).astype(compute_dtype),  # (D, 2Lp)
        bvu=jnp.concatenate([pad_l(bv), pad_l(bu)], axis=1).astype(jnp.float32),    # (1, 2Lp)
        ww=pad_l(ww.T).astype(jnp.float32),                                         # (1, Lp)
        # bw dropped: per-head scalar added before softmax cancels exactly.
        w1=w1.astype(compute_dtype),                                                # (D, H)
        b1=b1.astype(jnp.float32),                                                  # (1, H)
        w2=w2.T.astype(jnp.float32),                                                # (1, H)
        b2=b2.reshape(-1).astype(jnp.float32),                                      # (1,) SMEM
        Lp=Lp,
    )


def binary_classification_forward(x, prepped, *, max_bag_tile=32, max_inst_tile=512,
                                  single_buffer_weights=True):
    """x: (B, N, D) float32 -> logits (B,) float32."""
    B, N, D = x.shape
    Lp = prepped["Lp"]
    H = prepped["w1"].shape[1]
    l2p = 2 * Lp

    vmem_budget, vmem_limit, bf16_pool = _device_config()
    xc = x.astype(prepped["wvu"].dtype)

    TB, TN = _select_tiles(B, N, D, l2p, H, vmem_budget,
                           max_bag_tile=max_bag_tile, max_inst_tile=max_inst_tile,
                           bf16_pool=bf16_pool, single_buf_weights=single_buffer_weights)
    grid = (B // TB, N // TN)

    def const2(i, j):
        return (0, 0)

    cp_kwargs = dict(dimension_semantics=("parallel", "arbitrary"))
    if vmem_limit is not None:
        cp_kwargs["vmem_limit_bytes"] = vmem_limit
    compiler_params = pltpu.CompilerParams(**cp_kwargs)

    kernel = functools.partial(_abmil_kernel, bf16_pool=bf16_pool)

    def build(single_buf):
        def wspec(shape):
            if single_buf:
                # Resident weights (constant index_map): drop the useless second buffer.
                return pl.BlockSpec(shape, const2, pipeline_mode=pl.Buffered(1))
            return pl.BlockSpec(shape, const2)

        grid_spec = pltpu.PrefetchScalarGridSpec(
            num_scalar_prefetch=0,
            grid=grid,
            in_specs=[
                pl.BlockSpec((TB, TN, D), lambda i, j: (i, j, 0)),         # streamed x tile
                wspec((D, l2p)),                                           # fused gate weight
                wspec((1, l2p)),                                           # fused gate bias
                wspec((1, Lp)),                                            # ww row
                wspec((D, H)),                                             # classifier W1
                wspec((1, H)),                                             # classifier b1
                wspec((1, H)),                                             # classifier W2 row
                pl.BlockSpec(memory_space=pltpu.MemorySpace.SMEM),         # b2 scalar
            ],
            out_specs=pl.BlockSpec((TB, 1, 1), lambda i, j: (i, 0, 0)),
            scratch_shapes=[
                pltpu.VMEM((TB, 1), jnp.float32),   # running max
                pltpu.VMEM((TB, 1), jnp.float32),   # running softmax denom
                pltpu.VMEM((TB, D), jnp.float32),   # unnormalized pooled feature
            ],
        )
        return pl.pallas_call(
            kernel,
            out_shape=jax.ShapeDtypeStruct((B, 1, 1), jnp.float32),
            grid_spec=grid_spec,
            compiler_params=compiler_params,
        )

    args = (xc, prepped["wvu"], prepped["bvu"], prepped["ww"],
            prepped["w1"], prepped["b1"], prepped["w2"], prepped["b2"])

    if single_buffer_weights:
        try:
            out = build(True)(*args)
            jax.block_until_ready(out)
            return out.reshape(B)
        except Exception:
            pass  # pipeline_mode unsupported -> fall back to default double-buffering
    out = build(False)(*args)
    return out.reshape(B)  # == .squeeze(1) on the (B, 1) logits


def ref_forward(x, params):
    """Pure-JAX f32 reference of the same forward pass."""
    wv, bv, wu, bu, ww, bw, w1, b1, w2, b2 = params
    av = jnp.tanh(x @ wv + bv)                       # (B, N, L)
    au = jax.nn.sigmoid(x @ wu + bu)                 # (B, N, L)
    scores = (av * au) @ ww + bw                     # (B, N, 1)
    attn = jax.nn.softmax(scores, axis=1)            # softmax over instances
    feat = jnp.einsum('bnh,bnd->bhd', attn, x)       # (B, 1, D)
    feat = feat.reshape(x.shape[0], -1)              # view(B, -1)
    h = jnp.maximum(feat @ w1 + b1, 0.0)
    return (h @ w2 + b2).squeeze(1)


def init_params(key, input_feature_dim, head_dim, hidden_dim, n_heads=1):
    ks = jax.random.split(key, 10)
    scale = 0.05

    def lin(kw, kb, fan_in, fan_out):
        w = jax.random.normal(kw, (fan_in, fan_out), jnp.float32) * scale
        b = jax.random.normal(kb, (1, fan_out), jnp.float32) * scale
        return w, b

    wv, bv = lin(ks[0], ks[1], input_feature_dim, head_dim)     # attention V branch (tanh)
    wu, bu = lin(ks[2], ks[3], input_feature_dim, head_dim)     # attention U branch (sigmoid)
    ww, bw = lin(ks[4], ks[5], head_dim, n_heads)               # attention scores
    w1, b1 = lin(ks[6], ks[7], input_feature_dim, hidden_dim)   # classifier Linear 1
    w2, b2 = lin(ks[8], ks[9], hidden_dim, 1)                   # classifier Linear 2
    return (wv, bv, wu, bu, ww, bw, w1, b1, w2, b2)


if __name__ == "__main__":
    # Small, module-consistent shapes: B bags, N instances per bag, D features.
    B, N, D = 4, 16, 32
    HEAD_DIM, HIDDEN_DIM = 16, 16

    key = jax.random.PRNGKey(0)
    kx, kp = jax.random.split(key)
    x = jax.random.normal(kx, (B, N, D), jnp.float32)
    params = init_params(kp, D, HEAD_DIM, HIDDEN_DIM)
    prepped = prepare_params(params)      # one-time weight prep (fuse / pad / cast)

    expected = ref_forward(x, params)

    # 1) Default (VMEM-budget-driven) tiling.
    logits = jax.block_until_ready(binary_classification_forward(x, prepped))
    assert logits.shape == (B,)
    assert jnp.allclose(logits, expected, atol=2e-2, rtol=2e-2), (logits, expected)

    # 2) Forced multi-tile grid (2 bag tiles x 2 instance tiles) to exercise the
    #    online-softmax accumulation path and the parallel/arbitrary grid.
    logits_tiled = jax.block_until_ready(
        binary_classification_forward(x, prepped, max_bag_tile=2, max_inst_tile=8))
    assert jnp.allclose(logits_tiled, expected, atol=2e-2, rtol=2e-2), (logits_tiled, expected)

    print("KERNEL_OK")
</pallas_src>

<mosaic_0001>
module attributes {stable_mosaic.version = 11 : i64} {
  func.func @_abmil_kernel(%arg0: i32, %arg1: i32, %arg2: memref<2x16x32xbf16, #tpu.memory_space<vmem>>, %arg3: memref<32x256xbf16, #tpu.memory_space<vmem>>, %arg4: memref<1x256xf32, #tpu.memory_space<vmem>>, %arg5: memref<1x128xf32, #tpu.memory_space<vmem>>, %arg6: memref<32x16xbf16, #tpu.memory_space<vmem>>, %arg7: memref<1x16xf32, #tpu.memory_space<vmem>>, %arg8: memref<1x16xf32, #tpu.memory_space<vmem>>, %arg9: memref<1xf32, #tpu.memory_space<smem>>, %arg10: memref<2x1x1xf32, #tpu.memory_space<vmem>>, %arg11: memref<2x1xf32, #tpu.memory_space<vmem>>, %arg12: memref<2x1xf32, #tpu.memory_space<vmem>>, %arg13: memref<2x32xf32, #tpu.memory_space<vmem>>) attributes {dimension_semantics = [#tpu.dimension_semantics<parallel>, #tpu.dimension_semantics<arbitrary>], iteration_bounds = array<i64: 2, 1>, scalar_prefetch = 0 : i64, scratch_operands = 3 : i64, tpu.core_type = #tpu.core_type<tc>, window_params = [{transform_indices = @transform_0, window_bounds = array<i64: 2, 16, 32>}, {pipeline_mode = #tpu.pipeline_mode<synchronous>, transform_indices = @transform_1, window_bounds = array<i64: 32, 256>}, {pipeline_mode = #tpu.pipeline_mode<synchronous>, transform_indices = @transform_2, window_bounds = array<i64: 1, 256>}, {pipeline_mode = #tpu.pipeline_mode<synchronous>, transform_indices = @transform_3, window_bounds = array<i64: 1, 128>}, {pipeline_mode = #tpu.pipeline_mode<synchronous>, transform_indices = @transform_4, window_bounds = array<i64: 32, 16>}, {pipeline_mode = #tpu.pipeline_mode<synchronous>, transform_indices = @transform_5, window_bounds = array<i64: 1, 16>}, {pipeline_mode = #tpu.pipeline_mode<synchronous>, transform_indices = @transform_6, window_bounds = array<i64: 1, 16>}, {transform_indices = @transform_7, window_bounds = array<i64: 1>}, {transform_indices = @transform_8, window_bounds = array<i64: 2, 1, 1>}]} {
    %c0_i32 = arith.constant 0 : i32
    %0 = arith.cmpi eq, %arg1, %c0_i32 : i32
    %1 = arith.extui %0 : i1 to i32
    %c0_i32_0 = arith.constant 0 : i32
    %2 = arith.cmpi ne, %1, %c0_i32_0 : i32
    scf.if %2 {
      %cst_28 = arith.constant 0xFF800000 : f32
      %54 = vector.broadcast %cst_28 : f32 to vector<2x1xf32>
      %c0_29 = arith.constant 0 : index
      %c0_30 = arith.constant 0 : index
      %55 = vector.load %arg11[%c0_29, %c0_30] : memref<2x1xf32, #tpu.memory_space<vmem>>, vector<2x1xf32>
      tpu.vector_store %arg11[%c0_29, %c0_30], %54 {strides = array<i32>} : memref<2x1xf32, #tpu.memory_space<vmem>>, vector<2x1xf32>,
      %cst_31 = arith.constant 0.000000e+00 : f32
      %56 = vector.broadcast %cst_31 : f32 to vector<2x1xf32>
      %c0_32 = arith.constant 0 : index
      %c0_33 = arith.constant 0 : index
      %57 = vector.load %arg12[%c0_32, %c0_33] : memref<2x1xf32, #tpu.memory_space<vmem>>, vector<2x1xf32>
      tpu.vector_store %arg12[%c0_32, %c0_33], %56 {strides = array<i32>} : memref<2x1xf32, #tpu.memory_space<vmem>>, vector<2x1xf32>,
      %cst_34 = arith.constant 0.000000e+00 : f32
      %58 = vector.broadcast %cst_34 : f32 to vector<2x32xf32>
      %c0_35 = arith.constant 0 : index
      %c0_36 = arith.constant 0 : index
      %59 = vector.load %arg13[%c0_35, %c0_36] : memref<2x32xf32, #tpu.memory_space<vmem>>, vector<2x32xf32>
      tpu.vector_store %arg13[%c0_35, %c0_36], %58 {strides = array<i32>} : memref<2x32xf32, #tpu.memory_space<vmem>>, vector<2x32xf32>,
    } else {
    }
    %c0 = arith.constant 0 : index
    %c0_1 = arith.constant 0 : index
    %c0_2 = arith.constant 0 : index
    %3 = vector.load %arg2[%c0, %c0_1, %c0_2] : memref<2x16x32xbf16, #tpu.memory_space<vmem>>, vector<2x16x32xbf16>
    %4 = vector.shape_cast %3 : vector<2x16x32xbf16> to vector<32x32xbf16>
    %c0_3 = arith.constant 0 : index
    %c0_4 = arith.constant 0 : index
    %5 = vector.load %arg3[%c0_3, %c0_4] : memref<32x256xbf16, #tpu.memory_space<vmem>>, vector<32x256xbf16>
    %cst = arith.constant dense<0.000000e+00> : vector<32x256xf32>
    %6 = tpu.matmul %4, %5, %cst {dimension_numbers = #tpu.dot_dimension_numbers<[1], [0], [0], [1], [0, 0, 1, 1], [], []>} : vector<32x32xbf16>, vector<32x256xbf16>, vector<32x256xf32> -> vector<32x256xf32>
    %c0_5 = arith.constant 0 : index
    %c0_6 = arith.constant 0 : index
    %7 = vector.load %arg4[%c0_5, %c0_6] : memref<1x256xf32, #tpu.memory_space<vmem>>, vector<1x256xf32>
    %8 = vector.broadcast %7 : vector<1x256xf32> to vector<32x256xf32>
    %9 = arith.addf %6, %8 : vector<32x256xf32>
    %10 = vector.extract_strided_slice %9 {offsets = [0, 0], sizes = [32, 128], strides = [1, 1]} : vector<32x256xf32> to vector<32x128xf32>
    %11 = math.tanh %10 : vector<32x128xf32>
    %12 = vector.extract_strided_slice %9 {offsets = [0, 128], sizes = [32, 128], strides = [1, 1]} : vector<32x256xf32> to vector<32x128xf32>
    %13 = arith.negf %12 : vector<32x128xf32>
    %14 = math.exp %13 : vector<32x128xf32>
    %cst_7 = arith.constant 1.000000e+00 : f32
    %15 = vector.broadcast %cst_7 : f32 to vector<32x128xf32>
    %16 = arith.addf %15, %14 : vector<32x128xf32>
    %17 = arith.divf %15, %16 : vector<32x128xf32>
    %18 = arith.mulf %11, %17 : vector<32x128xf32>
    %19 = vector.shape_cast %18 : vector<32x128xf32> to vector<2x16x128xf32>
    %c0_8 = arith.constant 0 : index
    %c0_9 = arith.constant 0 : index
    %20 = vector.load %arg5[%c0_8, %c0_9] : memref<1x128xf32, #tpu.memory_space<vmem>>, vector<1x128xf32>
    %21 = vector.shape_cast %20 : vector<1x128xf32> to vector<1x1x128xf32>
    %22 = vector.broadcast %21 : vector<1x1x128xf32> to vector<2x16x128xf32>
    %23 = arith.mulf %19, %22 : vector<2x16x128xf32>
    %cst_10 = arith.constant dense<0.000000e+00> : vector<2x16xf32>
    %24 = vector.multi_reduction <add>, %23, %cst_10 [2] : vector<2x16x128xf32> to vector<2x16xf32>
    %c0_11 = arith.constant 0 : index
    %c0_12 = arith.constant 0 : index
    %25 = vector.load %arg11[%c0_11, %c0_12] : memref<2x1xf32, #tpu.memory_space<vmem>>, vector<2x1xf32>
    %cst_13 = arith.constant dense<0xFF800000> : vector<2xf32>
    %26 = vector.multi_reduction <maximumf>, %24, %cst_13 [1] : vector<2x16xf32> to vector<2xf32>
    %27 = vector.shape_cast %26 : vector<2xf32> to vector<2x1xf32>
    %28 = arith.maximumf %25, %27 : vector<2x1xf32>
    %29 = arith.subf %25, %28 : vector<2x1xf32>
    %30 = math.exp %29 : vector<2x1xf32>
    %31 = vector.broadcast %28 : vector<2x1xf32> to vector<2x16xf32>
    %32 = arith.subf %24, %31 : vector<2x16xf32>
    %33 = math.exp %32 : vector<2x16xf32>
    %c0_14 = arith.constant 0 : index
    %c0_15 = arith.constant 0 : index
    %34 = vector.load %arg12[%c0_14, %c0_15] : memref<2x1xf32, #tpu.memory_space<vmem>>, vector<2x1xf32>
    %35 = arith.mulf %30, %34 : vector<2x1xf32>
    %cst_16 = arith.constant dense<0.000000e+00> : vector<2xf32>
    %36 = vector.multi_reduction <add>, %33, %cst_16 [1] : vector<2x16xf32> to vector<2xf32>
    %37 = vector.shape_cast %36 : vector<2xf32> to vector<2x1xf32>
    %38 = arith.addf %35, %37 : vector<2x1xf32>
    %c0_17 = arith.constant 0 : index
    %c0_18 = arith.constant 0 : index
    %39 = vector.load %arg12[%c0_17, %c0_18] : memref<2x1xf32, #tpu.memory_space<vmem>>, vector<2x1xf32>
    tpu.vector_store %arg12[%c0_17, %c0_18], %38 {strides = array<i32>} : memref<2x1xf32, #tpu.memory_space<vmem>>, vector<2x1xf32>,
    %40 = vector.shape_cast %33 : vector<2x16xf32> to vector<2x16x1xf32>
    %41 = arith.extf %3 : vector<2x16x32xbf16> to vector<2x16x32xf32>
    %42 = vector.broadcast %40 : vector<2x16x1xf32> to vector<2x16x32xf32>
    %43 = arith.mulf %42, %41 : vector<2x16x32xf32>
    %cst_19 = arith.constant dense<0.000000e+00> : vector<2x32xf32>
    %44 = vector.multi_reduction <add>, %43, %cst_19 [1] : vector<2x16x32xf32> to vector<2x32xf32>
    %c0_20 = arith.constant 0 : index
    %c0_21 = arith.constant 0 : index
    %45 = vector.load %arg13[%c0_20, %c0_21] : memref<2x32xf32, #tpu.memory_space<vmem>>, vector<2x32xf32>
    %46 = vector.broadcast %30 : vector<2x1xf32> to vector<2x32xf32>
    %47 = arith.mulf %46, %45 : vector<2x32xf32>
    %48 = arith.addf %47, %44 : vector<2x32xf32>
    %c0_22 = arith.constant 0 : index
    %c0_23 = arith.constant 0 : index
    %49 = vector.load %arg13[%c0_22, %c0_23] : memref<2x32xf32, #tpu.memory_space<vmem>>, vector<2x32xf32>
    tpu.vector_store %arg13[%c0_22, %c0_23], %48 {strides = array<i32>} : memref<2x32xf32, #tpu.memory_space<vmem>>, vector<2x32xf32>,
    %c0_24 = arith.constant 0 : index
    %c0_25 = arith.constant 0 : index
    %50 = vector.load %arg11[%c0_24, %c0_25] : memref<2x1xf32, #tpu.memory_space<vmem>>, vector<2x1xf32>
    tpu.vector_store %arg11[%c0_24, %c0_25], %28 {strides = array<i32>} : memref<2x1xf32, #tpu.memory_space<vmem>>, vector<2x1xf32>,
    %c0_i32_26 = arith.constant 0 : i32
    %51 = arith.cmpi eq, %arg1, %c0_i32_26 : i32
    %52 = arith.extui %51 : i1 to i32
    %c0_i32_27 = arith.constant 0 : i32
    %53 = arith.cmpi ne, %52, %c0_i32_27 : i32
    scf.if %53 {
      %c0_28 = arith.constant 0 : index
      %c0_29 = arith.constant 0 : index
      %54 = vector.load %arg13[%c0_28, %c0_29] : memref<2x32xf32, #tpu.memory_space<vmem>>, vector<2x32xf32>
      %c0_30 = arith.constant 0 : index
      %c0_31 = arith.constant 0 : index
      %55 = vector.load %arg12[%c0_30, %c0_31] : memref<2x1xf32, #tpu.memory_space<vmem>>, vector<2x1xf32>
      %56 = vector.broadcast %55 : vector<2x1xf32> to vector<2x32xf32>
      %57 = arith.divf %54, %56 : vector<2x32xf32>
      %58 = arith.truncf %57 : vector<2x32xf32> to vector<2x32xbf16>
      %c0_32 = arith.constant 0 : index
      %c0_33 = arith.constant 0 : index
      %59 = vector.load %arg6[%c0_32, %c0_33] : memref<32x16xbf16, #tpu.memory_space<vmem>>, vector<32x16xbf16>
      %cst_34 = arith.constant dense<0.000000e+00> : vector<2x16xf32>
      %60 = tpu.matmul %58, %59, %cst_34 {dimension_numbers = #tpu.dot_dimension_numbers<[1], [0], [0], [1], [0, 0, 1, 1], [], []>} : vector<2x32xbf16>, vector<32x16xbf16>, vector<2x16xf32> -> vector<2x16xf32>
      %c0_35 = arith.constant 0 : index
      %c0_36 = arith.constant 0 : index
      %61 = vector.load %arg7[%c0_35, %c0_36] : memref<1x16xf32, #tpu.memory_space<vmem>>, vector<1x16xf32>
      %62 = vector.broadcast %61 : vector<1x16xf32> to vector<2x16xf32>
      %63 = arith.addf %60, %62 : vector<2x16xf32>
      %cst_37 = arith.constant 0.000000e+00 : f32
      %64 = vector.broadcast %cst_37 : f32 to vector<2x16xf32>
      %65 = arith.maximumf %63, %64 : vector<2x16xf32>
      %c0_38 = arith.constant 0 : index
      %c0_39 = arith.constant 0 : index
      %66 = vector.load %arg8[%c0_38, %c0_39] : memref<1x16xf32, #tpu.memory_space<vmem>>, vector<1x16xf32>
      %67 = vector.broadcast %66 : vector<1x16xf32> to vector<2x16xf32>
      %68 = arith.mulf %65, %67 : vector<2x16xf32>
      %cst_40 = arith.constant dense<0.000000e+00> : vector<2xf32>
      %69 = vector.multi_reduction <add>, %68, %cst_40 [1] : vector<2x16xf32> to vector<2xf32>
      %70 = vector.shape_cast %69 : vector<2xf32> to vector<2x1xf32>
      %c0_41 = arith.constant 0 : index
      %71 = memref.load %arg9[%c0_41] : memref<1xf32, #tpu.memory_space<smem>>
      %72 = vector.broadcast %71 : f32 to vector<2x1xf32>
      %73 = arith.addf %70, %72 : vector<2x1xf32>
      %74 = vector.shape_cast %73 : vector<2x1xf32> to vector<2x1x1xf32>
      %c0_42 = arith.constant 0 : index
      %c0_43 = arith.constant 0 : index
      %c0_44 = arith.constant 0 : index
      %75 = vector.load %arg10[%c0_42, %c0_43, %c0_44] : memref<2x1x1xf32, #tpu.memory_space<vmem>>, vector<2x1x1xf32>
      tpu.vector_store %arg10[%c0_42, %c0_43, %c0_44], %74 {strides = array<i32>} : memref<2x1x1xf32, #tpu.memory_space<vmem>>, vector<2x1x1xf32>,
    } else {
    }
    return
  }
  func.func @transform_0(%arg0: i32, %arg1: i32) -> (i32, i32, i32) {
    %c0_i32 = arith.constant 0 : i32
    %c0_i32_0 = arith.constant 0 : i32
    return %arg0, %arg1, %c0_i32 : i32, i32, i32
  }
  func.func @transform_1(%arg0: i32, %arg1: i32) -> (i32, i32) {
    %c0_i32 = arith.constant 0 : i32
    %c0_i32_0 = arith.constant 0 : i32
    %c0_i32_1 = arith.constant 0 : i32
    return %c0_i32, %c0_i32_0 : i32, i32
  }
  func.func @transform_2(%arg0: i32, %arg1: i32) -> (i32, i32) {
    %c0_i32 = arith.constant 0 : i32
    %c0_i32_0 = arith.constant 0 : i32
    %c0_i32_1 = arith.constant 0 : i32
    return %c0_i32, %c0_i32_0 : i32, i32
  }
  func.func @transform_3(%arg0: i32, %arg1: i32) -> (i32, i32) {
    %c0_i32 = arith.constant 0 : i32
    %c0_i32_0 = arith.constant 0 : i32
    %c0_i32_1 = arith.constant 0 : i32
    return %c0_i32, %c0_i32_0 : i32, i32
  }
  func.func @transform_4(%arg0: i32, %arg1: i32) -> (i32, i32) {
    %c0_i32 = arith.constant 0 : i32
    %c0_i32_0 = arith.constant 0 : i32
    %c0_i32_1 = arith.constant 0 : i32
    return %c0_i32, %c0_i32_0 : i32, i32
  }
  func.func @transform_5(%arg0: i32, %arg1: i32) -> (i32, i32) {
    %c0_i32 = arith.constant 0 : i32
    %c0_i32_0 = arith.constant 0 : i32
    %c0_i32_1 = arith.constant 0 : i32
    return %c0_i32, %c0_i32_0 : i32, i32
  }
  func.func @transform_6(%arg0: i32, %arg1: i32) -> (i32, i32) {
    %c0_i32 = arith.constant 0 : i32
    %c0_i32_0 = arith.constant 0 : i32
    %c0_i32_1 = arith.constant 0 : i32
    return %c0_i32, %c0_i32_0 : i32, i32
  }
  func.func @transform_7(%arg0: i32, %arg1: i32) -> i32 {
    %c0_i32 = arith.constant 0 : i32
    %c0_i32_0 = arith.constant 0 : i32
    return %c0_i32 : i32
  }
  func.func @transform_8(%arg0: i32, %arg1: i32) -> (i32, i32, i32) {
    %c0_i32 = arith.constant 0 : i32
    %c0_i32_0 = arith.constant 0 : i32
    %c0_i32_1 = arith.constant 0 : i32
    return %arg0, %c0_i32, %c0_i32_0 : i32, i32, i32
  }
}

module attributes {stable_mosaic.version = 11 : i64} {
  func.func @_abmil_kernel(%arg0: i32, %arg1: i32, %arg2: memref<2x16x32xbf16, #tpu.memory_space<vmem>>, %arg3: memref<32x256xbf16, #tpu.memory_space<vmem>>, %arg4: memref<1x256xf32, #tpu.memory_space<vmem>>, %arg5: memref<1x128xf32, #tpu.memory_space<vmem>>, %arg6: memref<32x16xbf16, #tpu.memory_space<vmem>>, %arg7: memref<1x16xf32, #tpu.memory_space<vmem>>, %arg8: memref<1x16xf32, #tpu.memory_space<vmem>>, %arg9: memref<1xf32, #tpu.memory_space<smem>>, %arg10: memref<2x1x1xf32, #tpu.memory_space<vmem>>, %arg11: memref<2x1xf32, #tpu.memory_space<vmem>>, %arg12: memref<2x1xf32, #tpu.memory_space<vmem>>, %arg13: memref<2x32xf32, #tpu.memory_space<vmem>>) attributes {dimension_semantics = [#tpu.dimension_semantics<parallel>, #tpu.dimension_semantics<arbitrary>], iteration_bounds = array<i64: 2, 1>, scalar_prefetch = 0 : i64, scratch_operands = 3 : i64, tpu.core_type = #tpu.core_type<tc>, window_params = [{transform_indices = @transform_0, window_bounds = array<i64: 2, 16, 32>}, {pipeline_mode = #tpu.pipeline_mode<synchronous>, transform_indices = @transform_1, window_bounds = array<i64: 32, 256>}, {pipeline_mode = #tpu.pipeline_mode<synchronous>, transform_indices = @transform_2, window_bounds = array<i64: 1, 256>}, {pipeline_mode = #tpu.pipeline_mode<synchronous>, transform_indices = @transform_3, window_bounds = array<i64: 1, 128>}, {pipeline_mode = #tpu.pipeline_mode<synchronous>, transform_indices = @transform_4, window_bounds = array<i64: 32, 16>}, {pipeline_mode = #tpu.pipeline_mode<synchronous>, transform_indices = @transform_5, window_bounds = array<i64: 1, 16>}, {pipeline_mode = #tpu.pipeline_mode<synchronous>, transform_indices = @transform_6, window_bounds = array<i64: 1, 16>}, {transform_indices = @transform_7, window_bounds = array<i64: 1>}, {transform_indices = @transform_8, window_bounds = array<i64: 2, 1, 1>}]} {
    %c0_i32 = arith.constant 0 : i32
    %0 = arith.cmpi eq, %arg1, %c0_i32 : i32
    %1 = arith.extui %0 : i1 to i32
    %c0_i32_0 = arith.constant 0 : i32
    %2 = arith.cmpi ne, %1, %c0_i32_0 : i32
    scf.if %2 {
      %cst_28 = arith.constant 0xFF800000 : f32
      %54 = vector.broadcast %cst_28 : f32 to vector<2x1xf32>
      %c0_29 = arith.constant 0 : index
      %c0_30 = arith.constant 0 : index
      %55 = vector.load %arg11[%c0_29, %c0_30] : memref<2x1xf32, #tpu.memory_space<vmem>>, vector<2x1xf32>
      tpu.vector_store %arg11[%c0_29, %c0_30], %54 {strides = array<i32>} : memref<2x1xf32, #tpu.memory_space<vmem>>, vector<2x1xf32>,
      %cst_31 = arith.constant 0.000000e+00 : f32
      %56 = vector.broadcast %cst_31 : f32 to vector<2x1xf32>
      %c0_32 = arith.constant 0 : index
      %c0_33 = arith.constant 0 : index
      %57 = vector.load %arg12[%c0_32, %c0_33] : memref<2x1xf32, #tpu.memory_space<vmem>>, vector<2x1xf32>
      tpu.vector_store %arg12[%c0_32, %c0_33], %56 {strides = array<i32>} : memref<2x1xf32, #tpu.memory_space<vmem>>, vector<2x1xf32>,
      %cst_34 = arith.constant 0.000000e+00 : f32
      %58 = vector.broadcast %cst_34 : f32 to vector<2x32xf32>
      %c0_35 = arith.constant 0 : index
      %c0_36 = arith.constant 0 : index
      %59 = vector.load %arg13[%c0_35, %c0_36] : memref<2x32xf32, #tpu.memory_space<vmem>>, vector<2x32xf32>
      tpu.vector_store %arg13[%c0_35, %c0_36], %58 {strides = array<i32>} : memref<2x32xf32, #tpu.memory_space<vmem>>, vector<2x32xf32>,
    } else {
    }
    %c0 = arith.constant 0 : index
    %c0_1 = arith.constant 0 : index
    %c0_2 = arith.constant 0 : index
    %3 = vector.load %arg2[%c0, %c0_1, %c0_2] : memref<2x16x32xbf16, #tpu.memory_space<vmem>>, vector<2x16x32xbf16>
    %4 = vector.shape_cast %3 : vector<2x16x32xbf16> to vector<32x32xbf16>
    %c0_3 = arith.constant 0 : index
    %c0_4 = arith.constant 0 : index
    %5 = vector.load %arg3[%c0_3, %c0_4] : memref<32x256xbf16, #tpu.memory_space<vmem>>, vector<32x256xbf16>
    %cst = arith.constant dense<0.000000e+00> : vector<32x256xf32>
    %6 = tpu.matmul %4, %5, %cst {dimension_numbers = #tpu.dot_dimension_numbers<[1], [0], [0], [1], [0, 0, 1, 1], [], []>} : vector<32x32xbf16>, vector<32x256xbf16>, vector<32x256xf32> -> vector<32x256xf32>
    %c0_5 = arith.constant 0 : index
    %c0_6 = arith.constant 0 : index
    %7 = vector.load %arg4[%c0_5, %c0_6] : memref<1x256xf32, #tpu.memory_space<vmem>>, vector<1x256xf32>
    %8 = vector.broadcast %7 : vector<1x256xf32> to vector<32x256xf32>
    %9 = arith.addf %6, %8 : vector<32x256xf32>
    %10 = vector.extract_strided_slice %9 {offsets = [0, 0], sizes = [32, 128], strides = [1, 1]} : vector<32x256xf32> to vector<32x128xf32>
    %11 = math.tanh %10 : vector<32x128xf32>
    %12 = vector.extract_strided_slice %9 {offsets = [0, 128], sizes = [32, 128], strides = [1, 1]} : vector<32x256xf32> to vector<32x128xf32>
    %13 = arith.negf %12 : vector<32x128xf32>
    %14 = math.exp %13 : vector<32x128xf32>
    %cst_7 = arith.constant 1.000000e+00 : f32
    %15 = vector.broadcast %cst_7 : f32 to vector<32x128xf32>
    %16 = arith.addf %15, %14 : vector<32x128xf32>
    %17 = arith.divf %15, %16 : vector<32x128xf32>
    %18 = arith.mulf %11, %17 : vector<32x128xf32>
    %19 = vector.shape_cast %18 : vector<32x128xf32> to vector<2x16x128xf32>
    %c0_8 = arith.constant 0 : index
    %c0_9 = arith.constant 0 : index
    %20 = vector.load %arg5[%c0_8, %c0_9] : memref<1x128xf32, #tpu.memory_space<vmem>>, vector<1x128xf32>
    %21 = vector.shape_cast %20 : vector<1x128xf32> to vector<1x1x128xf32>
    %22 = vector.broadcast %21 : vector<1x1x128xf32> to vector<2x16x128xf32>
    %23 = arith.mulf %19, %22 : vector<2x16x128xf32>
    %cst_10 = arith.constant dense<0.000000e+00> : vector<2x16xf32>
    %24 = vector.multi_reduction <add>, %23, %cst_10 [2] : vector<2x16x128xf32> to vector<2x16xf32>
    %c0_11 = arith.constant 0 : index
    %c0_12 = arith.constant 0 : index
    %25 = vector.load %arg11[%c0_11, %c0_12] : memref<2x1xf32, #tpu.memory_space<vmem>>, vector<2x1xf32>
    %cst_13 = arith.constant dense<0xFF800000> : vector<2xf32>
    %26 = vector.multi_reduction <maximumf>, %24, %cst_13 [1] : vector<2x16xf32> to vector<2xf32>
    %27 = vector.shape_cast %26 : vector<2xf32> to vector<2x1xf32>
    %28 = arith.maximumf %25, %27 : vector<2x1xf32>
    %29 = arith.subf %25, %28 : vector<2x1xf32>
    %30 = math.exp %29 : vector<2x1xf32>
    %31 = vector.broadcast %28 : vector<2x1xf32> to vector<2x16xf32>
    %32 = arith.subf %24, %31 : vector<2x16xf32>
    %33 = math.exp %32 : vector<2x16xf32>
    %c0_14 = arith.constant 0 : index
    %c0_15 = arith.constant 0 : index
    %34 = vector.load %arg12[%c0_14, %c0_15] : memref<2x1xf32, #tpu.memory_space<vmem>>, vector<2x1xf32>
    %35 = arith.mulf %30, %34 : vector<2x1xf32>
    %cst_16 = arith.constant dense<0.000000e+00> : vector<2xf32>
    %36 = vector.multi_reduction <add>, %33, %cst_16 [1] : vector<2x16xf32> to vector<2xf32>
    %37 = vector.shape_cast %36 : vector<2xf32> to vector<2x1xf32>
    %38 = arith.addf %35, %37 : vector<2x1xf32>
    %c0_17 = arith.constant 0 : index
    %c0_18 = arith.constant 0 : index
    %39 = vector.load %arg12[%c0_17, %c0_18] : memref<2x1xf32, #tpu.memory_space<vmem>>, vector<2x1xf32>
    tpu.vector_store %arg12[%c0_17, %c0_18], %38 {strides = array<i32>} : memref<2x1xf32, #tpu.memory_space<vmem>>, vector<2x1xf32>,
    %40 = vector.shape_cast %33 : vector<2x16xf32> to vector<2x16x1xf32>
    %41 = arith.extf %3 : vector<2x16x32xbf16> to vector<2x16x32xf32>
    %42 = vector.broadcast %40 : vector<2x16x1xf32> to vector<2x16x32xf32>
    %43 = arith.mulf %42, %41 : vector<2x16x32xf32>
    %cst_19 = arith.constant dense<0.000000e+00> : vector<2x32xf32>
    %44 = vector.multi_reduction <add>, %43, %cst_19 [1] : vector<2x16x32xf32> to vector<2x32xf32>
    %c0_20 = arith.constant 0 : index
    %c0_21 = arith.constant 0 : index
    %45 = vector.load %arg13[%c0_20, %c0_21] : memref<2x32xf32, #tpu.memory_space<vmem>>, vector<2x32xf32>
    %46 = vector.broadcast %30 : vector<2x1xf32> to vector<2x32xf32>
    %47 = arith.mulf %46, %45 : vector<2x32xf32>
    %48 = arith.addf %47, %44 : vector<2x32xf32>
    %c0_22 = arith.constant 0 : index
    %c0_23 = arith.constant 0 : index
    %49 = vector.load %arg13[%c0_22, %c0_23] : memref<2x32xf32, #tpu.memory_space<vmem>>, vector<2x32xf32>
    tpu.vector_store %arg13[%c0_22, %c0_23], %48 {strides = array<i32>} : memref<2x32xf32, #tpu.memory_space<vmem>>, vector<2x32xf32>,
    %c0_24 = arith.constant 0 : index
    %c0_25 = arith.constant 0 : index
    %50 = vector.load %arg11[%c0_24, %c0_25] : memref<2x1xf32, #tpu.memory_space<vmem>>, vector<2x1xf32>
    tpu.vector_store %arg11[%c0_24, %c0_25], %28 {strides = array<i32>} : memref<2x1xf32, #tpu.memory_space<vmem>>, vector<2x1xf32>,
    %c0_i32_26 = arith.constant 0 : i32
    %51 = arith.cmpi eq, %arg1, %c0_i32_26 : i32
    %52 = arith.extui %51 : i1 to i32
    %c0_i32_27 = arith.constant 0 : i32
    %53 = arith.cmpi ne, %52, %c0_i32_27 : i32
    scf.if %53 {
      %c0_28 = arith.constant 0 : index
      %c0_29 = arith.constant 0 : index
      %54 = vector.load %arg13[%c0_28, %c0_29] : memref<2x32xf32, #tpu.memory_space<vmem>>, vector<2x32xf32>
      %c0_30 = arith.constant 0 : index
      %c0_31 = arith.constant 0 : index
      %55 = vector.load %arg12[%c0_30, %c0_31] : memref<2x1xf32, #tpu.memory_space<vmem>>, vector<2x1xf32>
      %56 = vector.broadcast %55 : vector<2x1xf32> to vector<2x32xf32>
      %57 = arith.divf %54, %56 : vector<2x32xf32>
      %58 = arith.truncf %57 : vector<2x32xf32> to vector<2x32xbf16>
      %c0_32 = arith.constant 0 : index
      %c0_33 = arith.constant 0 : index
      %59 = vector.load %arg6[%c0_32, %c0_33] : memref<32x16xbf16, #tpu.memory_space<vmem>>, vector<32x16xbf16>
      %cst_34 = arith.constant dense<0.000000e+00> : vector<2x16xf32>
      %60 = tpu.matmul %58, %59, %cst_34 {dimension_numbers = #tpu.dot_dimension_numbers<[1], [0], [0], [1], [0, 0, 1, 1], [], []>} : vector<2x32xbf16>, vector<32x16xbf16>, vector<2x16xf32> -> vector<2x16xf32>
      %c0_35 = arith.constant 0 : index
      %c0_36 = arith.constant 0 : index
      %61 = vector.load %arg7[%c0_35, %c0_36] : memref<1x16xf32, #tpu.memory_space<vmem>>, vector<1x16xf32>
      %62 = vector.broadcast %61 : vector<1x16xf32> to vector<2x16xf32>
      %63 = arith.addf %60, %62 : vector<2x16xf32>
      %cst_37 = arith.constant 0.000000e+00 : f32
      %64 = vector.broadcast %cst_37 : f32 to vector<2x16xf32>
      %65 = arith.maximumf %63, %64 : vector<2x16xf32>
      %c0_38 = arith.constant 0 : index
      %c0_39 = arith.constant 0 : index
      %66 = vector.load %arg8[%c0_38, %c0_39] : memref<1x16xf32, #tpu.memory_space<vmem>>, vector<1x16xf32>
      %67 = vector.broadcast %66 : vector<1x16xf32> to vector<2x16xf32>
      %68 = arith.mulf %65, %67 : vector<2x16xf32>
      %cst_40 = arith.constant dense<0.000000e+00> : vector<2xf32>
      %69 = vector.multi_reduction <add>, %68, %cst_40 [1] : vector<2x16xf32> to vector<2xf32>
      %70 = vector.shape_cast %69 : vector<2xf32> to vector<2x1xf32>
      %c0_41 = arith.constant 0 : index
      %71 = memref.load %arg9[%c0_41] : memref<1xf32, #tpu.memory_space<smem>>
      %72 = vector.broadcast %71 : f32 to vector<2x1xf32>
      %73 = arith.addf %70, %72 : vector<2x1xf32>
      %74 = vector.shape_cast %73 : vector<2x1xf32> to vector<2x1x1xf32>
      %c0_42 = arith.constant 0 : index
      %c0_43 = arith.constant 0 : index
      %c0_44 = arith.constant 0 : index
      %75 = vector.load %arg10[%c0_42, %c0_43, %c0_44] : memref<2x1x1xf32, #tpu.memory_space<vmem>>, vector<2x1x1xf32>
      tpu.vector_store %arg10[%c0_42, %c0_43, %c0_44], %74 {strides = array<i32>} : memref<2x1x1xf32, #tpu.memory_space<vmem>>, vector<2x1x1xf32>,
    } else {
    }
    return
  }
  func.func @transform_0(%arg0: i32, %arg1: i32) -> (i32, i32, i32) {
    %c0_i32 = arith.constant 0 : i32
    %c0_i32_0 = arith.constant 0 : i32
    return %arg0, %arg1, %c0_i32 : i32, i32, i32
  }
  func.func @transform_1(%arg0: i32, %arg1: i32) -> (i32, i32) {
    %c0_i32 = arith.constant 0 : i32
    %c0_i32_0 = arith.constant 0 : i32
    %c0_i32_1 = arith.constant 0 : i32
    return %c0_i32, %c0_i32_0 : i32, i32
  }
  func.func @transform_2(%arg0: i32, %arg1: i32) -> (i32, i32) {
    %c0_i32 = arith.constant 0 : i32
    %c0_i32_0 = arith.constant 0 : i32
    %c0_i32_1 = arith.constant 0 : i32
    return %c0_i32, %c0_i32_0 : i32, i32
  }
  func.func @transform_3(%arg0: i32, %arg1: i32) -> (i32, i32) {
    %c0_i32 = arith.constant 0 : i32
    %c0_i32_0 = arith.constant 0 : i32
    %c0_i32_1 = arith.constant 0 : i32
    return %c0_i32, %c0_i32_0 : i32, i32
  }
  func.func @transform_4(%arg0: i32, %arg1: i32) -> (i32, i32) {
    %c0_i32 = arith.constant 0 : i32
    %c0_i32_0 = arith.constant 0 : i32
    %c0_i32_1 = arith.constant 0 : i32
    return %c0_i32, %c0_i32_0 : i32, i32
  }
  func.func @transform_5(%arg0: i32, %arg1: i32) -> (i32, i32) {
    %c0_i32 = arith.constant 0 : i32
    %c0_i32_0 = arith.constant 0 : i32
    %c0_i32_1 = arith.constant 0 : i32
    return %c0_i32, %c0_i32_0 : i32, i32
  }
  func.func @transform_6(%arg0: i32, %arg1: i32) -> (i32, i32) {
    %c0_i32 = arith.constant 0 : i32
    %c0_i32_0 = arith.constant 0 : i32
    %c0_i32_1 = arith.constant 0 : i32
    return %c0_i32, %c0_i32_0 : i32, i32
  }
  func.func @transform_7(%arg0: i32, %arg1: i32) -> i32 {
    %c0_i32 = arith.constant 0 : i32
    %c0_i32_0 = arith.constant 0 : i32
    return %c0_i32 : i32
  }
  func.func @transform_8(%arg0: i32, %arg1: i32) -> (i32, i32, i32) {
    %c0_i32 = arith.constant 0 : i32
    %c0_i32_0 = arith.constant 0 : i32
    %c0_i32_1 = arith.constant 0 : i32
    return %arg0, %c0_i32, %c0_i32_0 : i32, i32, i32
  }
}

</mosaic_0001>

<bundles_post_ra>
// kernel: tpu_custom_call.1
= control target key start
LH: loop header
LB: loop body
LE: loop exit
PB: predicated region body
PF: predicated region fallthrough
CT: control target
= control target key end

     0   :  { %s1392_s0 = inlined_call_operand.hbm [shape: bf16[4,16,32], index: 0, kind: input, shape index: {}]   ;;  %s1393_s1 = inlined_call_operand.hbm [shape: bf16[32,256], index: 1, kind: input, shape index: {}]   ;;  %s1394_s2 = inlined_call_operand.vmem [shape: f32[1,256], index: 2, kind: input, shape index: {}]   ;;  %s1395_s3 = inlined_call_operand.vmem [shape: f32[1,128], index: 3, kind: input, shape index: {}]   ;;  %s1396_s4 = inlined_call_operand.vmem [shape: bf16[32,16], index: 4, kind: input, shape index: {}]   ;;  %s1397_s5 = inlined_call_operand.vmem [shape: f32[1,16], index: 5, kind: input, shape index: {}]   ;;  %s1398_s6 = inlined_call_operand.vmem [shape: f32[1,16], index: 6, kind: input, shape index: {}]   ;;  %s1399_s7 = inlined_call_operand.<no memory space> [shape: f32[1], index: 7, kind: input, shape index: {}]   ;;  %s1400_s8 = inlined_call_operand.vmem [shape: f32[4,1,1], index: 8, kind: output, shape index: {}]  }
   0x1   :  { %1402 = sst [smem:[#allocation13_spill]] %s1393_s1 }
   0x2   :  { %13 = sst [smem:[#allocation5]] %s1399_s7 }
   0x3   :  { %14 = vsyncpa [#allocation7], 0 }
   0x4   :  { %16 = vsyncpa [#allocation7 + $0x1], 0 }
   0x5   :  { %17 = vsyncpa [#allocation9], 0  ;;  %s1206_s29 = smov 0   ;;  %s1208_s30 = smov 0  }
   0x6   :  { %s1210_s9 = smov 0   ;;  %s1212_s10 = smov 0  }
   0x7   :  { %s1214_s11 = smov 0   ;;  %s1216_s12 = smov 0  }
   0x8 LB: > { %s851_s7 = sadd.s32 4294967295, %s1148_s12   ;;  %p57_p0 = scmp.ne.s32.totalorder %s1132_s30, %s1128_s29  ;;  %s1148_s12 = sphi %s1216_s12, %s23_s12   ;;  %s1144_s11 = sphi %s1214_s11, %s1414_s11   ;;  %s1140_s10 = sphi %s1212_s10, %s1413_s10   ;;  %s1136_s9 = sphi %s1210_s9, %s1412_s9   ;;  %s1132_s30 = sphi %s1208_s30, %s1411_s30   ;;  %s1128_s29 = sphi %s1206_s29, %s1410_s29  }
   0x9   : > { %p1236_p1 = scmp.eq.s32.totalorder %s851_s7, 0  ;;  %p853_p2 = scmp.ge.s32.totalorder %s1148_s12, 1 }
   0xa   : > { %p241_p3 = scmp.lt.s32.totalorder %s1148_s12, 3  ;;  %s1405_s1 = sld [smem:[#allocation13_spill]] }
   0xb   : > { %p1244_p4 = por %p1236_p1, %p57_p0  ;;  %s1150_s19 = smov [#allocation8]  }
   0xc   : > { %p1251_p5 = pnand %p853_p2, %p241_p3  ;;  %s254_s20 = sshll.u32 %s1150_s19, 4  ;;  %s255_s20 = int_to_ptr.vmem [resolvable:$true] %s254_s20 }
   0xd   : > { %s1151_s21 = smov 128   ;;  %s1152_s22 = smov 8  }
   0xe   : > { %p925_p6 = pneg %p1251_p5  ;;  %s35_s23 = sadd.s32 1, %s1144_s11 }
   0xf   : > { %p37_p8 = scmp.ge.s32.totalorder %s35_s23, 2  ;;  %s44_s24 = sadd.s32 1, %s1136_s9 }
  0x10   : > { %s252_s17 = sshll.u32 %s1405_s1, 4  ;;  %p926_p7 = pnand %p925_p6, %p1236_p1  ;;  %s253_s17 = int_to_ptr.hbm [resolvable:$true] %s252_s17 }
  0x11   : > { %p51_p9 = scmp.ne.s32.totalorder %s1136_s9, %s1132_s30  ;;  %p52_p10 = scmp.eq.s32.totalorder %s1148_s12, 0 }
  0x12   : > { %928 = dma.hbm_to_vmem [thread:$0]  (!%p926_p7), %s253_s17, 512, %s255_s20, [#allocation9], %s1151_s21, %s1151_s21, %s1152_s22  }
  0x13   : > { %s1416_s23 = smov (%p37_p8, %s35_s23), 0  ;;  %p1266_p11 = por %p52_p10, %p51_p9 }
  0x14   : > { %1407 = sst [smem:[#allocation12_spill]] %s1416_s23  ;;  %p934_p12 = scmp.lt.s32.totalorder %s1148_s12, 2 }
  0x15   : > { %s39_s26 = ssub.s32 %s1144_s11, %s1416_s23  ;;  %s286_s27 = sand.u32 1, %s1136_s9  }
  0x16   : > { %p42_p13 = scmp.eq.s32.totalorder %s39_s26, 0  ;;  %s856_s28 = sshll.u32 %s286_s27, 4 }
  0x17   : > { %s908_s29 = sshll.u32 %s1144_s11, 4  ;;  %s290_s20 = scalar_lea.vmem [#allocation6], %s856_s28 }
  0x18   : > { %s1276_s7 = scalar_select %p42_p13, %s1136_s9, %s44_s24  }
  0x19   : > { %s298_s17 = scalar_lea.hbm %s1392_s0, %s908_s29  ;;  %s301_s21 = sshll.u32 %s290_s20, 4  ;;  %s302_s21 = int_to_ptr.vmem [resolvable:$true] %s301_s21 }
  0x1a   : > { %s299_s19 = sshll.u32 %s298_s17, 4  ;;  %p930_p0 = pnand %p934_p12, %p1266_p11  ;;  %s300_s19 = int_to_ptr.hbm [resolvable:$true] %s299_s19 }
  0x1b   : > { %s287_s22 = scalar_lea.sflag [#allocation7], %s286_s27  ;;  %s1153_s1 = smov 64  }
  0x1c   : > { %s1154_s23 = smov 4   ;;  %313 = sbr.rel (%p1251_p5) target bundleno = 1193 (0x4a9), region = 52 }
  0x1d   : > { %932 = dma.hbm_to_vmem [thread:$0]  (!%p930_p0), %s300_s19, 256, %s302_s21, %s287_s22, %s1153_s1, %s1153_s1, %s1154_s23  }
  0x1e   : > { %s315_s24 = sand.u32 (!%p1251_p5), 1, %s1132_s30  }
  0x1f   : > { %s861_s26 = sshll.u32 (!%p1251_p5), %s315_s24, 4  ;;  %s316_s29 = scalar_lea.sflag (!%p1251_p5), [#allocation7], %s315_s24 }
  0x20   : > { %s1288_s15 = scalar_lea.vmem (!%p1251_p5), [#allocation6], %s861_s26 }
  0x21   : > { %1119 = dma.done.wait (%p1244_p4), %s316_s29, 256  }
  0x22   : > { %1121 = vsyncadd (%p1244_p4), %s316_s29, 4294967040 }
  0x23   : > { %1123 = dma.done.wait (%p1236_p1), [#allocation9], 512  }
  0x24   : > { %1125 = vsyncadd (%p1236_p1), [#allocation9], 4294966784  ;;  %v913_v0 = vld [vmem:[#allocation8 + $0x14] sm:$0xf]  ;;  %v884_v1 = vld [vmem:[#allocation8 + $0x18] sm:$0xf0] }
  0x25   : > { %v911_v2 = vld [vmem:[#allocation8 + $0x4] sm:$0xf]  ;;  %v887_v3 = vor.u32 %v913_v0, %v884_v1  ;;  %v876_v4 = vld [vmem:[#allocation8 + $0x8] sm:$0xf0]  ;;  %v882_v5 = vld [vmem:[#allocation8 + $0x10] sm:$0xf] }
  0x26   : > { %v914_v6 = vld [vmem:[#allocation8 + $0x14] sm:$0xf0]  ;;  %v874_v7 = vld [vmem:[#allocation8] sm:$0xf]  ;;  %v879_v8 = vor.u32 %v911_v2, %v876_v4  ;;  %v912_v10 = vld [vmem:[#allocation8 + $0x4] sm:$0xf0] }
  0x27   : > { %450 = vmatpush.bf16.msra.mxu1 %v887_v3  ;;  %v883_v9 = vor.u32 %v914_v6, %v882_v5  ;;  %v875_v11 = vor.u32 %v912_v10, %v874_v7  ;;  %v909_v12 = vld [vmem:[%s1288_s15] sm:$0xff]  ;;  %vm418_vm0 = vcmask 261120   ;;  %v910_v13 = vld [vmem:[%s1288_s15 + $0x8] sm:$0xff]  ;;  %s757_s21 = sld [smem:[#allocation5]]  ;;  %s863_s22 = sshll.u32 %s1140_s10, 1 }
  0x28   : > { %v382_v14 = vld [vmem:[%s1394_s2] sm:$0x3]  ;;  %p360_p1 = scmp.lt.s32.totalorder %s863_s22, 3 }
  0x29   : > { %431 = vmatpush.bf16.msra.mxu0 %v883_v9  ;;  %917 = vmatpush.bf16.msra.mxu3 %v883_v9  ;;  %v385_v15 = vperm.slane %v382_v14, 1  ;;  %v1307_v25 = vperm.slane %v382_v14, 0  ;;  %v1314_v50 = vld [vmem:[%s1395_s3] ss:$0 sm:$0xff] }
  0x2a   : > { %s1418_s22 = smov (!%p360_p1, %s863_s22), 3 }
  0x2b   : > { %451 = vmatpush.bf16.msra.mxu1 %v879_v8  ;;  %s362_s29 = scalar_lea.vmem %s1400_s8, %s1418_s22 }
  0x2d   : > { %432 = vmatpush.bf16.msra.mxu0 %v875_v11  ;;  %918 = vmatpush.bf16.msra.mxu3 %v875_v11 }
  0x2e   : > { %890 = vmatmul.msk.bf16.vlgmr.msra.gmra.mxu1 %vm418_vm0, %v909_v12 }
  0x30   : > { %888 = vmatmul.msk.bf16.vlgmr.msra.gmra.mxu0 %vm418_vm0, %v909_v12  ;;  %889 = vmatmul.msk.bf16.vlgmr.msra.gmra.mxu3 %vm418_vm0, %v910_v13 }
  0x3e   : > { %891 = vmatmul.msk.bf16.gmra.mxu1 %vm418_vm0, %v910_v13 }
  0xab   : > { %v453_v16 = vpop.f32.mrf.mxu1 }
  0xac   : > { %v454_v17 = vadd.f32 %v453_v16, %v385_v15 }
  0xad   : > { %v434_v23 = vpop.f32.mrf.mxu0 }
  0xae   : > { %v892_v18 = vmul.f32 -1.442695, %v454_v17  ;;  %v435_v27 = vadd.f32 %v434_v23, %v1307_v25 }
  0xb0   : > { %998 = vpow2.f32 %v892_v18 }
  0xb3   : > { %v455_v19 = vpop.f32.mrf.mxu1  ;;  %v439_v53 = vpop.f32.mrf.mxu3 }
  0xb4   : > { %v456_v20 = vadd.f32 %v455_v19, %v385_v15  ;;  %v440_v56 = vadd.f32 %v439_v53, %v1307_v25 }
  0xb5   : > { %v436_v33 = vpop.f32.mrf.mxu0 }
  0xb6   : > { %v999_v21 = vpop.eup %998  ;;  %v893_v22 = vmul.f32 -1.442695, %v456_v20  ;;  %v437_v37 = vadd.f32 %v436_v33, %v1307_v25 }
  0xb7   : > { %v479_v24 = vadd.f32 1.0, %v999_v21 }
  0xb8   : > { %1000 = vpow2.f32 %v893_v22 }
  0xb9   : > { %1002 = vrcp.f32 %v479_v24  ;;  %v494_v38 = vand.u32 2147483648, %v479_v24  ;;  %v492_v41 = vand.u32 2147483647, %v479_v24  ;;  %vm488_vm2 = vweird.f32 %v479_v24 }
  0xba   : > { %1004 = vtanh.f32 %v435_v27 }
  0xbb   : > { %v458_v26 = vpop.f32.mrf.mxu1  ;;  %v495_v48 = vor.u32 1.1754944e-38, %v494_v38  ;;  %vm493_vm4 = vcmp.eq.f32.partialorder %v492_v41, 8.507059e+37  ;;  %v441_v9 = vpop.f32.mrf.mxu3 }
  0xbc   : > { %v459_v28 = vadd.f32 %v458_v26, %v385_v15  ;;  %v442_v16 = vadd.f32 %v441_v9, %v1307_v25 }
  0xbe   : > { %v1001_v29 = vpop.eup %1000  ;;  %v894_v30 = vmul.f32 -1.442695, %v459_v28 }
  0xbf   : > { %v1003_v31 = vpop.eup %1002  ;;  %v480_v32 = vadd.f32 1.0, %v1001_v29 }
  0xc0   : > { %1006 = vpow2.f32 %v894_v30  ;;  %v484_v34 = vmul.f32 %v1003_v31, %v479_v24  ;;  %vm489_vm1 = vweird.f32 %v1003_v31  ;;  %v1005_v42 = vpop.eup %1004 }
  0xc1   : > { %1008 = vrcp.f32 %v480_v32  ;;  %vm490_vm3 = vmor %vm488_vm2, %vm489_vm1  ;;  %v509_v57 = vand.u32 2147483648, %v480_v32  ;;  %v507_v60 = vand.u32 2147483647, %v480_v32  ;;  %vm503_vm6 = vweird.f32 %v480_v32 }
  0xc2   : > { %v485_v35 = vsub.f32 1.0, %v484_v34  ;;  %1010 = vtanh.f32 %v437_v37  ;;  %vm369_vm2 = vcmask 1024   ;;  %v1155_v34 = vmov -inf  }
  0xc3   : > { %v460_v36 = vpop.f32.mrf.mxu1  ;;  %v510_v2 = vor.u32 1.1754944e-38, %v509_v57  ;;  %vm508_vm8 = vcmp.eq.f32.partialorder %v507_v60, 8.507059e+37  ;;  %370 = vst.msk [vmem:[#allocation2] sm:$0x3] %vm369_vm2, %v1155_v34 }
  0xc4   : > { %v461_v39 = vadd.f32 %v460_v36, %v385_v15  ;;  %v486_v40 = vmul.f32 %v1003_v31, %v485_v35  ;;  %v568_v36 = vlaneseq }
  0xc6   : > { %v1007_v43 = vpop.eup %1006  ;;  %v895_v44 = vmul.f32 -1.442695, %v461_v39  ;;  %v487_v45 = vadd.f32 %v1003_v31, %v486_v40  ;;  %v1323_v38 = vand.u32 127, %v568_v36 }
  0xc7   : > { %v1009_v46 = vpop.eup %1008  ;;  %v481_v47 = vadd.f32 1.0, %v1007_v43 }
  0xc8   : > { %1012 = vpow2.f32 %v895_v44  ;;  %v491_v49 = vsel %vm490_vm3, %v1003_v31, %v487_v45  ;;  %v499_v51 = vmul.f32 %v1009_v46, %v480_v32  ;;  %vm504_vm5 = vweird.f32 %v1009_v46  ;;  %v1011_v61 = vpop.eup %1010 }
  0xc9   : > { %1014 = vrcp.f32 %v481_v47  ;;  %v496_v52 = vsel %vm493_vm4, %v495_v48, %v491_v49  ;;  %vm505_vm7 = vmor %vm503_vm6, %vm504_vm5  ;;  %v524_v8 = vand.u32 2147483648, %v481_v47  ;;  %v522_v12 = vand.u32 2147483647, %v481_v47 }
  0xca   : > { %v543_v54 = vmul.f32 %v1005_v42, %v496_v52  ;;  %v500_v55 = vsub.f32 1.0, %v499_v51  ;;  %1016 = vtanh.f32 %v440_v56  ;;  %vm518_vm10 = vweird.f32 %v481_v47  ;;  %v563_v52 = vld [vmem:[#allocation2] sm:$0x3] }
  0xcb   : > { %v525_v17 = vor.u32 1.1754944e-38, %v524_v8  ;;  %vm523_vm12 = vcmp.eq.f32.partialorder %v522_v12, 8.507059e+37  ;;  %v1326_v39 = vadd.s32 4294967288, %v1323_v38  ;;  %vm573_vm3 = vcmask 130112  }
  0xcc   : > { %v551_v58 = vmul.f32 %v1314_v50, %v543_v54  ;;  %v501_v59 = vmul.f32 %v1009_v46, %v500_v55  ;;  %vm578_vm4 = vcmask 1041409   ;;  %vm581_vm5 = vcmask 123904  }
  0xcd   : > { %v1157_v51 = vmov 0.0   ;;  %vm372_vm6 = vcmask 254976  }
  0xce   : > { %v1013_v62 = vpop.eup %1012  ;;  %555 = vadd.xlane.f32.xlu0 %v551_v58  ;;  %v502_v63 = vadd.f32 %v1009_v46, %v501_v59  ;;  %371 = vst.msk [vmem:[#allocation3] sm:$0x3] %vm369_vm2, %v1157_v51 }
  0xcf   : > { %v1015_v0 = vpop.eup %1014  ;;  %v482_v1 = vadd.f32 1.0, %v1013_v62  ;;  %373 = vst.msk [vmem:[#allocation4] sm:$0x3] %vm372_vm6, %v1157_v51 }
  0xd0   : > { %v506_v3 = vsel %vm505_vm7, %v1009_v46, %v502_v63  ;;  %v514_v4 = vmul.f32 %v1015_v0, %v481_v47  ;;  %vm519_vm9 = vweird.f32 %v1015_v0  ;;  %v1017_v13 = vpop.eup %1016 }
  0xd1   : > { %1018 = vrcp.f32 %v482_v1  ;;  %v511_v5 = vsel %vm508_vm8, %v510_v2, %v506_v3  ;;  %vm520_vm11 = vmor %vm518_vm10, %vm519_vm9  ;;  %v539_v23 = vand.u32 2147483648, %v482_v1  ;;  %v537_v27 = vand.u32 2147483647, %v482_v1 }
  0xd2   : > { %v544_v6 = vmul.f32 %v1011_v61, %v511_v5  ;;  %v515_v7 = vsub.f32 1.0, %v514_v4  ;;  %1020 = vtanh.f32 %v442_v16  ;;  %vm533_vm14 = vweird.f32 %v482_v1 }
  0xd3   : > { %v540_v25 = vor.u32 1.1754944e-38, %v539_v23  ;;  %vm538_vm1 = vcmp.eq.f32.partialorder %v537_v27, 8.507059e+37 }
  0xd4   : > { %v552_v10 = vmul.f32 %v1314_v50, %v544_v6  ;;  %v516_v11 = vmul.f32 %v1015_v0, %v515_v7 }
  0xd6   : > { %557 = vadd.xlane.f32.xlu0 %v552_v10  ;;  %v517_v14 = vadd.f32 %v1015_v0, %v516_v11  ;;  %v376_v10 = vld [vmem:[%s1288_s15 + $0x8] sm:$0xff]  }
  0xd7   : > { %v1019_v15 = vpop.eup %1018  ;;  %v644_v11 = vunpack.c.h.bf16 %v376_v10  ;;  %v643_v12 = vunpack.c.l.bf16 %v376_v10 }
  0xd8   : > { %v521_v18 = vsel %vm520_vm11, %v1015_v0, %v517_v14  ;;  %v529_v19 = vmul.f32 %v1019_v15, %v482_v1  ;;  %vm534_vm13 = vweird.f32 %v1019_v15  ;;  %v1021_v30 = vpop.eup %1020 }
  0xd9   : > { %v526_v20 = vsel %vm523_vm12, %v525_v17, %v521_v18  ;;  %vm535_vm15 = vmor %vm533_vm14, %vm534_vm13 }
  0xda   : > { %v545_v21 = vmul.f32 %v1017_v13, %v526_v20  ;;  %v530_v22 = vsub.f32 1.0, %v529_v19  ;;  %v375_v19 = vld [vmem:[%s1288_s15] sm:$0xff]  }
  0xdc   : > { %v553_v24 = vmul.f32 %v1314_v50, %v545_v21  ;;  %v531_v26 = vmul.f32 %v1019_v15, %v530_v22  ;;  %v641_v21 = vunpack.c.l.bf16 %v375_v19  ;;  %v642_v22 = vunpack.c.h.bf16 %v375_v19 }
  0xdd   : > { %v758_v19 = vstv %s757_s21 }
  0xde   : > { %559 = vadd.xlane.f32.xlu1 %v553_v24  ;;  %v532_v28 = vadd.f32 %v1019_v15, %v531_v26 }
  0xe0   : > { %v536_v29 = vsel %vm535_vm15, %v1019_v15, %v532_v28 }
  0xe1   : > { %v541_v31 = vsel %vm538_vm1, %v540_v25, %v536_v29 }
  0xe2   : > { %v546_v32 = vmul.f32 %v1021_v30, %v541_v31 }
  0xe4   : > { %v554_v33 = vmul.f32 %v1314_v50, %v546_v32  ;;  %v1156_v50 = vmov 0  }
  0xe5   : > { %992 = vset.pattern.permute.xlu2 %v1156_v50  ;;  %994 = vset.pattern.permute.xlu1 %v1156_v50 }
  0xe6   : > { %561 = vadd.xlane.f32.xlu1 %v554_v33  ;;  %993 = vset.pattern.permute.xlu0 %v1156_v50 }
 0x141   : > { %v556_v35 = vpop.xlane.xlu0 %555 }
 0x142   : > { %v570_v43 = vperm.slane %v556_v35, %v1323_v38 }
 0x149   : > { %v558_v40 = vpop.xlane.xlu0 %557 }
 0x14a   : > { %v572_v41 = vperm.slane %v558_v40, %v1326_v39 }
 0x14c   : > { %v574_v46 = vsel %vm573_vm3, %v572_v41, %v570_v43 }
 0x151   : > { %v560_v37 = vpop.xlane.xlu1 %559 }
 0x152   : > { %v575_v44 = vperm.slane %v560_v37, %v1323_v38 }
 0x159   : > { %v562_v42 = vpop.xlane.xlu1 %561 }
 0x15a   : > { %v576_v45 = vperm.slane %v562_v42, %v1326_v39 }
 0x15c   : > { %v577_v47 = vsel %vm573_vm3, %v576_v45, %v575_v44 }
 0x15d   : > { %v579_v48 = vsel %vm578_vm4, %v577_v47, %v574_v46  ;;  %v671_v47 = vld [vmem:[#allocation4] sm:$0x3] }
 0x15e   : > { %v582_v49 = vsel %vm581_vm5, %v579_v48, -inf }
 0x15f   : > { %583 = vmax.xlane.f32.xlu2 %v582_v49 }
 0x1d2   : > { %v584_v53 = vpop.xlane.xlu2 %583 }
 0x1d3   : > { %v585_v54 = vmax.f32 %v563_v52, %v584_v53 }
 0x1d5   : > { %v586_v55 = vsub.f32 %v563_v52, %v585_v54  ;;  %685 = vst.msk [vmem:[#allocation2] sm:$0x3] %vm369_vm2, %v585_v54  ;;  %591 = vperm.xlu2 %992, %v585_v54   ;;  %v609_v54 = vld [vmem:[#allocation3] sm:$0x3] }
 0x1d7   : > { %v587_v2 = vmul.f32 1.442695, %v586_v55 }
 0x22f   : > { %v592_v56 = vpop.permute.xlu2 %591 }
 0x230   : > { %v593_v57 = vperm.slane %v592_v56, 0  ;;  %v594_v58 = vperm.slane %v592_v56, 1 }
 0x232   : > { %v597_v59 = vsub.f32 %v556_v35, %v593_v57  ;;  %v598_v60 = vsub.f32 %v558_v40, %v593_v57  ;;  %v599_v61 = vsub.f32 %v560_v37, %v594_v58  ;;  %v600_v1 = vsub.f32 %v562_v42, %v594_v58 }
 0x234   : > { %v601_v62 = vmul.f32 1.442695, %v597_v59  ;;  %v603_v63 = vmul.f32 1.442695, %v598_v60  ;;  %v605_v0 = vmul.f32 1.442695, %v599_v61 }
 0x235   : > { %v607_v4 = vmul.f32 1.442695, %v600_v1  ;;  %v916_v59 = vld [vmem:[%s1396_s4 + $0x8] sm:$0xff]  ;;  %v915_v60 = vld [vmem:[%s1396_s4] sm:$0xff] }
 0x236   : > { %1022 = vpow2.f32 %v601_v62  ;;  %741 = vmatpush.bf16.msra.mxu2 %v916_v59 }
 0x237   : > { %1024 = vpow2.f32 %v603_v63 }
 0x238   : > { %1026 = vpow2.f32 %v605_v0 }
 0x239   : > { %1028 = vpow2.f32 %v587_v2 }
 0x23a   : > { %1030 = vpow2.f32 %v607_v4  ;;  %742 = vmatpush.bf16.msra.mxu2 %v915_v60 }
 0x23c   : > { %v1023_v3 = vpop.eup %1022 }
 0x23d   : > { %v1025_v5 = vpop.eup %1024  ;;  %616 = vperm.xlu0 %993, %v1023_v3  }
 0x23e   : > { %v1027_v6 = vpop.eup %1026  ;;  %619 = vperm.xlu1 %994, %v1025_v5  }
 0x23f   : > { %622 = vperm.xlu2 %992, %v1027_v6   ;;  %v1029_v7 = vpop.eup %1028 }
 0x240   : > { %v1031_v8 = vpop.eup %1030  ;;  %v610_v55 = vmul.f32 %v1029_v7, %v609_v54 }
 0x245   : > { %674 = vperm.xlu0 %993, %v1029_v7  }
 0x247   : > { %625 = vperm.xlu2 %992, %v1031_v8  }
 0x299   : > { %v623_v9 = vpop.permute.xlu2 %622 }
 0x29a   : > { %v651_v15 = vmul.f32 %v643_v12, %v623_v9  ;;  %v630_v29 = vperm.slane %v623_v9, %v1323_v38 }
 0x29c   : > { %v662_v17 = vsel %vm418_vm0, %v651_v15, 0.0 }
 0x2a1   : > { %v626_v13 = vpop.permute.xlu2 %625 }
 0x2a2   : > { %v652_v14 = vmul.f32 %v644_v11, %v626_v13  ;;  %v631_v23 = vperm.slane %v626_v13, %v1326_v39  ;;  %v996_v11 = vld [vmem:[%s1397_s5] ss:$0 sm:$0xff] }
 0x2a4   : > { %v663_v16 = vsel %vm418_vm0, %v652_v14, 0.0  ;;  %v632_v35 = vsel %vm573_vm3, %v631_v23, %v630_v29  ;;  %v997_v14 = vld [vmem:[%s1398_s6] ss:$0 sm:$0xff] }
 0x2a5   : > { %v664_v18 = vadd.f32 %v663_v16, %v662_v17 }
 0x2a7   : > { %v665_v20 = vrot.slane %v664_v18, 4 }
 0x2a9   : > { %v666_v26 = vadd.f32 %v665_v20, %v664_v18 }
 0x2ab   : > { %v667_v36 = vrot.slane %v666_v26, 2 }
 0x2af   : > { %v617_v24 = vpop.permute.xlu0 %616 }
 0x2b0   : > { %v620_v27 = vpop.permute.xlu1 %619  ;;  %v627_v28 = vperm.slane %v617_v24, %v1323_v38  ;;  %v649_v25 = vmul.f32 %v641_v21, %v617_v24  ;;  %v668_v38 = vadd.f32 %v667_v36, %v666_v26 }
 0x2b1   : > { %v628_v30 = vperm.slane %v620_v27, %v1326_v39  ;;  %v650_v31 = vmul.f32 %v642_v22, %v620_v27 }
 0x2b2   : > { %v653_v32 = vsel %vm418_vm0, %v649_v25, 0.0  ;;  %v669_v45 = vrot.slane %v668_v38, 1 }
 0x2b3   : > { %v654_v33 = vsel %vm418_vm0, %v650_v31, 0.0  ;;  %v629_v34 = vsel %vm573_vm3, %v628_v30, %v627_v28 }
 0x2b4   : > { %v655_v37 = vadd.f32 %v654_v33, %v653_v32  ;;  %v633_v40 = vsel %vm578_vm4, %v632_v35, %v629_v34  ;;  %v670_v50 = vadd.f32 %v669_v45, %v668_v38 }
 0x2b5   : > { %v635_v41 = vsel %vm581_vm5, %v633_v40, 0.0 }
 0x2b6   : > { %v656_v42 = vrot.slane %v655_v37, 4  ;;  %636 = vadd.xlane.f32.xlu1 %v635_v41 }
 0x2b7   : > { %v675_v48 = vpop.permute.xlu0 %674 }
 0x2b8   : > { %v657_v43 = vadd.f32 %v656_v42, %v655_v37  ;;  %v677_v51 = vmul.f32 %v675_v48, %v671_v47 }
 0x2ba   : > { %v658_v39 = vrot.slane %v657_v43, 2 }
 0x2bc   : > { %v659_v44 = vadd.f32 %v658_v39, %v657_v43 }
 0x2be   : > { %v660_v46 = vrot.slane %v659_v44, 1 }
 0x2c0   : > { %v661_v49 = vadd.f32 %v660_v46, %v659_v44 }
 0x2c2   : > { %v680_v52 = vsel %vm578_vm4, %v670_v50, %v661_v49 }
 0x2c3   : > { %v682_v53 = vadd.f32 %v680_v52, %v677_v51 }
 0x2c5   : > { %684 = vst.msk [vmem:[#allocation4] sm:$0x3] %vm372_vm6, %v682_v53 }
 0x2cc   : > { %v689_v7 = vld [vmem:[#allocation4] sm:$0x3] }
 0x329   : > { %v637_v56 = vpop.xlane.xlu1 %636 }
 0x32a   : > { %v638_v57 = vadd.f32 %v637_v56, %v610_v55 }
 0x32c   : > { %640 = vst.msk [vmem:[#allocation3] sm:$0x3] %vm369_vm2, %v638_v57 }
 0x333   : > { %v690_v58 = vld [vmem:[#allocation3] sm:$0x3] }
 0x334   : > { %693 = vperm.xlu2 %992, %v690_v58  }
 0x38e   : > { %v694_v61 = vpop.permute.xlu2 %693 }
 0x38f   : > { %1032 = vrcp.f32 %v694_v61  ;;  %v707_v1 = vand.u32 2147483648, %v694_v61  ;;  %v705_v3 = vand.u32 2147483647, %v694_v61  ;;  %vm701_vm8 = vweird.f32 %v694_v61 }
 0x391   : > { %v708_v5 = vor.u32 1.1754944e-38, %v707_v1  ;;  %vm706_vm10 = vcmp.eq.f32.partialorder %v705_v3, 8.507059e+37 }
 0x395   : > { %v1033_v62 = vpop.eup %1032 }
 0x396   : > { %v697_v63 = vmul.f32 %v1033_v62, %v694_v61  ;;  %vm702_vm7 = vweird.f32 %v1033_v62 }
 0x397   : > { %vm703_vm9 = vmor %vm701_vm8, %vm702_vm7 }
 0x398   : > { %v698_v0 = vsub.f32 1.0, %v697_v63 }
 0x39a   : > { %v699_v2 = vmul.f32 %v1033_v62, %v698_v0 }
 0x39c   : > { %v700_v4 = vadd.f32 %v1033_v62, %v699_v2 }
 0x39e   : > { %v704_v6 = vsel %vm703_vm9, %v1033_v62, %v700_v4 }
 0x39f   : > { %v709_v8 = vsel %vm706_vm10, %v708_v5, %v704_v6 }
 0x3a0   : > { %v710_v9 = vmul.f32 %v709_v8, %v689_v7 }
 0x3a2   : > { %v711_v10 = vpack.c.bf16 %v710_v9, %v710_v9 }
 0x3a4   : > { %904 = vmatmul.msk.bf16.vlgmr.msra.gmra.mxu2 %vm418_vm0, %v711_v10  ;;  %vm765_vm0 = vcmask 0  }
 0x427   : > { %v744_v12 = vpop.f32.mrf.mxu2 }
 0x428   : > { %v745_v13 = vadd.f32 %v996_v11, %v744_v12 }
 0x42a   : > { %v748_v15 = vmax.f32 %v745_v13, 0.0 }
 0x42c   : > { %v753_v16 = vmul.f32 %v997_v14, %v748_v15 }
 0x42e   : > { %v754_v17 = vsel %vm581_vm5, %v753_v16, 0.0 }
 0x42f   : > { %v746_v18 = vpop.f32.mrf.mxu2  ;;  %755 = vadd.xlane.f32.xlu2 %v754_v17 }
 0x4a2   : > { %v756_v20 = vpop.xlane.xlu2 %755 }
 0x4a3   : > { %v759_v21 = vadd.f32 %v758_v19, %v756_v20 }
 0x4a5   : > { %v761_v22 = vperm.slane %v759_v21, 0  ;;  %v762_v23 = vperm.slane %v759_v21, 1 }
 0x4a7   : > { %766 = vst.msk [vmem:[%s362_s29] sm:$0x1] %vm765_vm0, %v761_v22 }
 0x4a8   : > { %767 = vst.msk [vmem:[%s362_s29 + $0x1] sm:$0x1] %vm765_vm0, %v762_v23 }
 0x4a9 PF: > { %s23_s12 = sadd.s32 1, %s1148_s12   ;;  %s1409_s15 = sld [smem:[#allocation12_spill]] }
 0x4aa   : > { %p20_p2 = scmp.ge.s32.totalorder %s23_s12, 4   ;;  %s1410_s29 = smov %s1132_s30 }
 0x4ab   : > { %s1411_s30 = smov %s1136_s9  ;;  %s1412_s9 = smov %s1276_s7 }
 0x4ac   : > { %s1413_s10 = smov %s1144_s11  ;;  %22 = sbr.rel (!%p20_p2) target bundleno = 8 (0x8), region = 104 }
 0x4af   : > { %s1414_s11 = smov %s1409_s15 }
 0x4b1   :  { %788 = vsyncpa [#allocation7], 1 }
 0x4b2   :  { %790 = vsyncpa [#allocation7 + $0x1], 1 }
 0x4b3   :  { %791 = vsyncpa [#allocation9], 1 }

// kernel: tpu_custom_call.1
= control target key start
LH: loop header
LB: loop body
LE: loop exit
PB: predicated region body
PF: predicated region fallthrough
CT: control target
= control target key end

     0   :  { %s1392_s0 = inlined_call_operand.hbm [shape: bf16[4,16,32], index: 0, kind: input, shape index: {}]   ;;  %s1393_s1 = inlined_call_operand.hbm [shape: bf16[32,256], index: 1, kind: input, shape index: {}]   ;;  %s1394_s2 = inlined_call_operand.vmem [shape: f32[1,256], index: 2, kind: input, shape index: {}]   ;;  %s1395_s3 = inlined_call_operand.vmem [shape: f32[1,128], index: 3, kind: input, shape index: {}]   ;;  %s1396_s4 = inlined_call_operand.vmem [shape: bf16[32,16], index: 4, kind: input, shape index: {}]   ;;  %s1397_s5 = inlined_call_operand.vmem [shape: f32[1,16], index: 5, kind: input, shape index: {}]   ;;  %s1398_s6 = inlined_call_operand.vmem [shape: f32[1,16], index: 6, kind: input, shape index: {}]   ;;  %s1399_s7 = inlined_call_operand.<no memory space> [shape: f32[1], index: 7, kind: input, shape index: {}]   ;;  %s1400_s8 = inlined_call_operand.vmem [shape: f32[4,1,1], index: 8, kind: output, shape index: {}]  }
   0x1   :  { %1402 = sst [smem:[#allocation13_spill]] %s1393_s1 }
   0x2   :  { %13 = sst [smem:[#allocation5]] %s1399_s7 }
   0x3   :  { %14 = vsyncpa [#allocation7], 0 }
   0x4   :  { %16 = vsyncpa [#allocation7 + $0x1], 0 }
   0x5   :  { %17 = vsyncpa [#allocation9], 0  ;;  %s1206_s29 = smov 0   ;;  %s1208_s30 = smov 0  }
   0x6   :  { %s1210_s9 = smov 0   ;;  %s1212_s10 = smov 0  }
   0x7   :  { %s1214_s11 = smov 0   ;;  %s1216_s12 = smov 0  }
   0x8 LB: > { %s851_s7 = sadd.s32 4294967295, %s1148_s12   ;;  %p57_p0 = scmp.ne.s32.totalorder %s1132_s30, %s1128_s29  ;;  %s1148_s12 = sphi %s1216_s12, %s23_s12   ;;  %s1144_s11 = sphi %s1214_s11, %s1414_s11   ;;  %s1140_s10 = sphi %s1212_s10, %s1413_s10   ;;  %s1136_s9 = sphi %s1210_s9, %s1412_s9   ;;  %s1132_s30 = sphi %s1208_s30, %s1411_s30   ;;  %s1128_s29 = sphi %s1206_s29, %s1410_s29  }
   0x9   : > { %p1236_p1 = scmp.eq.s32.totalorder %s851_s7, 0  ;;  %p853_p2 = scmp.ge.s32.totalorder %s1148_s12, 1 }
   0xa   : > { %p241_p3 = scmp.lt.s32.totalorder %s1148_s12, 3  ;;  %s1405_s1 = sld [smem:[#allocation13_spill]] }
   0xb   : > { %p1244_p4 = por %p1236_p1, %p57_p0  ;;  %s1150_s19 = smov [#allocation8]  }
   0xc   : > { %p1251_p5 = pnand %p853_p2, %p241_p3  ;;  %s254_s20 = sshll.u32 %s1150_s19, 4  ;;  %s255_s20 = int_to_ptr.vmem [resolvable:$true] %s254_s20 }
   0xd   : > { %s1151_s21 = smov 128   ;;  %s1152_s22 = smov 8  }
   0xe   : > { %p925_p6 = pneg %p1251_p5  ;;  %s35_s23 = sadd.s32 1, %s1144_s11 }
   0xf   : > { %p37_p8 = scmp.ge.s32.totalorder %s35_s23, 2  ;;  %s44_s24 = sadd.s32 1, %s1136_s9 }
  0x10   : > { %s252_s17 = sshll.u32 %s1405_s1, 4  ;;  %p926_p7 = pnand %p925_p6, %p1236_p1  ;;  %s253_s17 = int_to_ptr.hbm [resolvable:$true] %s252_s17 }
  0x11   : > { %p51_p9 = scmp.ne.s32.totalorder %s1136_s9, %s1132_s30  ;;  %p52_p10 = scmp.eq.s32.totalorder %s1148_s12, 0 }
  0x12   : > { %928 = dma.hbm_to_vmem [thread:$0]  (!%p926_p7), %s253_s17, 512, %s255_s20, [#allocation9], %s1151_s21, %s1151_s21, %s1152_s22  }
  0x13   : > { %s1416_s23 = smov (%p37_p8, %s35_s23), 0  ;;  %p1266_p11 = por %p52_p10, %p51_p9 }
  0x14   : > { %1407 = sst [smem:[#allocation12_spill]] %s1416_s23  ;;  %p934_p12 = scmp.lt.s32.totalorder %s1148_s12, 2 }
  0x15   : > { %s39_s26 = ssub.s32 %s1144_s11, %s1416_s23  ;;  %s286_s27 = sand.u32 1, %s1136_s9  }
  0x16   : > { %p42_p13 = scmp.eq.s32.totalorder %s39_s26, 0  ;;  %s856_s28 = sshll.u32 %s286_s27, 4 }
  0x17   : > { %s908_s29 = sshll.u32 %s1144_s11, 4  ;;  %s290_s20 = scalar_lea.vmem [#allocation6], %s856_s28 }
  0x18   : > { %s1276_s7 = scalar_select %p42_p13, %s1136_s9, %s44_s24  }
  0x19   : > { %s298_s17 = scalar_lea.hbm %s1392_s0, %s908_s29  ;;  %s301_s21 = sshll.u32 %s290_s20, 4  ;;  %s302_s21 = int_to_ptr.vmem [resolvable:$true] %s301_s21 }
  0x1a   : > { %s299_s19 = sshll.u32 %s298_s17, 4  ;;  %p930_p0 = pnand %p934_p12, %p1266_p11  ;;  %s300_s19 = int_to_ptr.hbm [resolvable:$true] %s299_s19 }
  0x1b   : > { %s287_s22 = scalar_lea.sflag [#allocation7], %s286_s27  ;;  %s1153_s1 = smov 64  }
  0x1c   : > { %s1154_s23 = smov 4   ;;  %313 = sbr.rel (%p1251_p5) target bundleno = 1193 (0x4a9), region = 52 }
  0x1d   : > { %932 = dma.hbm_to_vmem [thread:$0]  (!%p930_p0), %s300_s19, 256, %s302_s21, %s287_s22, %s1153_s1, %s1153_s1, %s1154_s23  }
  0x1e   : > { %s315_s24 = sand.u32 (!%p1251_p5), 1, %s1132_s30  }
  0x1f   : > { %s861_s26 = sshll.u32 (!%p1251_p5), %s315_s24, 4  ;;  %s316_s29 = scalar_lea.sflag (!%p1251_p5), [#allocation7], %s315_s24 }
  0x20   : > { %s1288_s15 = scalar_lea.vmem (!%p1251_p5), [#allocation6], %s861_s26 }
  0x21   : > { %1119 = dma.done.wait (%p1244_p4), %s316_s29, 256  }
  0x22   : > { %1121 = vsyncadd (%p1244_p4), %s316_s29, 4294967040 }
  0x23   : > { %1123 = dma.done.wait (%p1236_p1), [#allocation9], 512  }
  0x24   : > { %1125 = vsyncadd (%p1236_p1), [#allocation9], 4294966784  ;;  %v913_v0 = vld [vmem:[#allocation8 + $0x14] sm:$0xf]  ;;  %v884_v1 = vld [vmem:[#allocation8 + $0x18] sm:$0xf0] }
  0x25   : > { %v911_v2 = vld [vmem:[#allocation8 + $0x4] sm:$0xf]  ;;  %v887_v3 = vor.u32 %v913_v0, %v884_v1  ;;  %v876_v4 = vld [vmem:[#allocation8 + $0x8] sm:$0xf0]  ;;  %v882_v5 = vld [vmem:[#allocation8 + $0x10] sm:$0xf] }
  0x26   : > { %v914_v6 = vld [vmem:[#allocation8 + $0x14] sm:$0xf0]  ;;  %v874_v7 = vld [vmem:[#allocation8] sm:$0xf]  ;;  %v879_v8 = vor.u32 %v911_v2, %v876_v4  ;;  %v912_v10 = vld [vmem:[#allocation8 + $0x4] sm:$0xf0] }
  0x27   : > { %450 = vmatpush.bf16.msra.mxu1 %v887_v3  ;;  %v883_v9 = vor.u32 %v914_v6, %v882_v5  ;;  %v875_v11 = vor.u32 %v912_v10, %v874_v7  ;;  %v909_v12 = vld [vmem:[%s1288_s15] sm:$0xff]  ;;  %vm418_vm0 = vcmask 261120   ;;  %v910_v13 = vld [vmem:[%s1288_s15 + $0x8] sm:$0xff]  ;;  %s757_s21 = sld [smem:[#allocation5]]  ;;  %s863_s22 = sshll.u32 %s1140_s10, 1 }
  0x28   : > { %v382_v14 = vld [vmem:[%s1394_s2] sm:$0x3]  ;;  %p360_p1 = scmp.lt.s32.totalorder %s863_s22, 3 }
  0x29   : > { %431 = vmatpush.bf16.msra.mxu0 %v883_v9  ;;  %917 = vmatpush.bf16.msra.mxu3 %v883_v9  ;;  %v385_v15 = vperm.slane %v382_v14, 1  ;;  %v1307_v25 = vperm.slane %v382_v14, 0  ;;  %v1314_v50 = vld [vmem:[%s1395_s3] ss:$0 sm:$0xff] }
  0x2a   : > { %s1418_s22 = smov (!%p360_p1, %s863_s22), 3 }
  0x2b   : > { %451 = vmatpush.bf16.msra.mxu1 %v879_v8  ;;  %s362_s29 = scalar_lea.vmem %s1400_s8, %s1418_s22 }
  0x2d   : > { %432 = vmatpush.bf16.msra.mxu0 %v875_v11  ;;  %918 = vmatpush.bf16.msra.mxu3 %v875_v11 }
  0x2e   : > { %890 = vmatmul.msk.bf16.vlgmr.msra.gmra.mxu1 %vm418_vm0, %v909_v12 }
  0x30   : > { %888 = vmatmul.msk.bf16.vlgmr.msra.gmra.mxu0 %vm418_vm0, %v909_v12  ;;  %889 = vmatmul.msk.bf16.vlgmr.msra.gmra.mxu3 %vm418_vm0, %v910_v13 }
  0x3e   : > { %891 = vmatmul.msk.bf16.gmra.mxu1 %vm418_vm0, %v910_v13 }
  0xab   : > { %v453_v16 = vpop.f32.mrf.mxu1 }
  0xac   : > { %v454_v17 = vadd.f32 %v453_v16, %v385_v15 }
  0xad   : > { %v434_v23 = vpop.f32.mrf.mxu0 }
  0xae   : > { %v892_v18 = vmul.f32 -1.442695, %v454_v17  ;;  %v435_v27 = vadd.f32 %v434_v23, %v1307_v25 }
  0xb0   : > { %998 = vpow2.f32 %v892_v18 }
  0xb3   : > { %v455_v19 = vpop.f32.mrf.mxu1  ;;  %v439_v53 = vpop.f32.mrf.mxu3 }
  0xb4   : > { %v456_v20 = vadd.f32 %v455_v19, %v385_v15  ;;  %v440_v56 = vadd.f32 %v439_v53, %v1307_v25 }
  0xb5   : > { %v436_v33 = vpop.f32.mrf.mxu0 }
  0xb6   : > { %v999_v21 = vpop.eup %998  ;;  %v893_v22 = vmul.f32 -1.442695, %v456_v20  ;;  %v437_v37 = vadd.f32 %v436_v33, %v1307_v25 }
  0xb7   : > { %v479_v24 = vadd.f32 1.0, %v999_v21 }
  0xb8   : > { %1000 = vpow2.f32 %v893_v22 }
  0xb9   : > { %1002 = vrcp.f32 %v479_v24  ;;  %v494_v38 = vand.u32 2147483648, %v479_v24  ;;  %v492_v41 = vand.u32 2147483647, %v479_v24  ;;  %vm488_vm2 = vweird.f32 %v479_v24 }
  0xba   : > { %1004 = vtanh.f32 %v435_v27 }
  0xbb   : > { %v458_v26 = vpop.f32.mrf.mxu1  ;;  %v495_v48 = vor.u32 1.1754944e-38, %v494_v38  ;;  %vm493_vm4 = vcmp.eq.f32.partialorder %v492_v41, 8.507059e+37  ;;  %v441_v9 = vpop.f32.mrf.mxu3 }
  0xbc   : > { %v459_v28 = vadd.f32 %v458_v26, %v385_v15  ;;  %v442_v16 = vadd.f32 %v441_v9, %v1307_v25 }
  0xbe   : > { %v1001_v29 = vpop.eup %1000  ;;  %v894_v30 = vmul.f32 -1.442695, %v459_v28 }
  0xbf   : > { %v1003_v31 = vpop.eup %1002  ;;  %v480_v32 = vadd.f32 1.0, %v1001_v29 }
  0xc0   : > { %1006 = vpow2.f32 %v894_v30  ;;  %v484_v34 = vmul.f32 %v1003_v31, %v479_v24  ;;  %vm489_vm1 = vweird.f32 %v1003_v31  ;;  %v1005_v42 = vpop.eup %1004 }
  0xc1   : > { %1008 = vrcp.f32 %v480_v32  ;;  %vm490_vm3 = vmor %vm488_vm2, %vm489_vm1  ;;  %v509_v57 = vand.u32 2147483648, %v480_v32  ;;  %v507_v60 = vand.u32 2147483647, %v480_v32  ;;  %vm503_vm6 = vweird.f32 %v480_v32 }
  0xc2   : > { %v485_v35 = vsub.f32 1.0, %v484_v34  ;;  %1010 = vtanh.f32 %v437_v37  ;;  %vm369_vm2 = vcmask 1024   ;;  %v1155_v34 = vmov -inf  }
  0xc3   : > { %v460_v36 = vpop.f32.mrf.mxu1  ;;  %v510_v2 = vor.u32 1.1754944e-38, %v509_v57  ;;  %vm508_vm8 = vcmp.eq.f32.partialorder %v507_v60, 8.507059e+37  ;;  %370 = vst.msk [vmem:[#allocation2] sm:$0x3] %vm369_vm2, %v1155_v34 }
  0xc4   : > { %v461_v39 = vadd.f32 %v460_v36, %v385_v15  ;;  %v486_v40 = vmul.f32 %v1003_v31, %v485_v35  ;;  %v568_v36 = vlaneseq }
  0xc6   : > { %v1007_v43 = vpop.eup %1006  ;;  %v895_v44 = vmul.f32 -1.442695, %v461_v39  ;;  %v487_v45 = vadd.f32 %v1003_v31, %v486_v40  ;;  %v1323_v38 = vand.u32 127, %v568_v36 }
  0xc7   : > { %v1009_v46 = vpop.eup %1008  ;;  %v481_v47 = vadd.f32 1.0, %v1007_v43 }
  0xc8   : > { %1012 = vpow2.f32 %v895_v44  ;;  %v491_v49 = vsel %vm490_vm3, %v1003_v31, %v487_v45  ;;  %v499_v51 = vmul.f32 %v1009_v46, %v480_v32  ;;  %vm504_vm5 = vweird.f32 %v1009_v46  ;;  %v1011_v61 = vpop.eup %1010 }
  0xc9   : > { %1014 = vrcp.f32 %v481_v47  ;;  %v496_v52 = vsel %vm493_vm4, %v495_v48, %v491_v49  ;;  %vm505_vm7 = vmor %vm503_vm6, %vm504_vm5  ;;  %v524_v8 = vand.u32 2147483648, %v481_v47  ;;  %v522_v12 = vand.u32 2147483647, %v481_v47 }
  0xca   : > { %v543_v54 = vmul.f32 %v1005_v42, %v496_v52  ;;  %v500_v55 = vsub.f32 1.0, %v499_v51  ;;  %1016 = vtanh.f32 %v440_v56  ;;  %vm518_vm10 = vweird.f32 %v481_v47  ;;  %v563_v52 = vld [vmem:[#allocation2] sm:$0x3] }
  0xcb   : > { %v525_v17 = vor.u32 1.1754944e-38, %v524_v8  ;;  %vm523_vm12 = vcmp.eq.f32.partialorder %v522_v12, 8.507059e+37  ;;  %v1326_v39 = vadd.s32 4294967288, %v1323_v38  ;;  %vm573_vm3 = vcmask 130112  }
  0xcc   : > { %v551_v58 = vmul.f32 %v1314_v50, %v543_v54  ;;  %v501_v59 = vmul.f32 %v1009_v46, %v500_v55  ;;  %vm578_vm4 = vcmask 1041409   ;;  %vm581_vm5 = vcmask 123904  }
  0xcd   : > { %v1157_v51 = vmov 0.0   ;;  %vm372_vm6 = vcmask 254976  }
  0xce   : > { %v1013_v62 = vpop.eup %1012  ;;  %555 = vadd.xlane.f32.xlu0 %v551_v58  ;;  %v502_v63 = vadd.f32 %v1009_v46, %v501_v59  ;;  %371 = vst.msk [vmem:[#allocation3] sm:$0x3] %vm369_vm2, %v1157_v51 }
  0xcf   : > { %v1015_v0 = vpop.eup %1014  ;;  %v482_v1 = vadd.f32 1.0, %v1013_v62  ;;  %373 = vst.msk [vmem:[#allocation4] sm:$0x3] %vm372_vm6, %v1157_v51 }
  0xd0   : > { %v506_v3 = vsel %vm505_vm7, %v1009_v46, %v502_v63  ;;  %v514_v4 = vmul.f32 %v1015_v0, %v481_v47  ;;  %vm519_vm9 = vweird.f32 %v1015_v0  ;;  %v1017_v13 = vpop.eup %1016 }
  0xd1   : > { %1018 = vrcp.f32 %v482_v1  ;;  %v511_v5 = vsel %vm508_vm8, %v510_v2, %v506_v3  ;;  %vm520_vm11 = vmor %vm518_vm10, %vm519_vm9  ;;  %v539_v23 = vand.u32 2147483648, %v482_v1  ;;  %v537_v27 = vand.u32 2147483647, %v482_v1 }
  0xd2   : > { %v544_v6 = vmul.f32 %v1011_v61, %v511_v5  ;;  %v515_v7 = vsub.f32 1.0, %v514_v4  ;;  %1020 = vtanh.f32 %v442_v16  ;;  %vm533_vm14 = vweird.f32 %v482_v1 }
  0xd3   : > { %v540_v25 = vor.u32 1.1754944e-38, %v539_v23  ;;  %vm538_vm1 = vcmp.eq.f32.partialorder %v537_v27, 8.507059e+37 }
  0xd4   : > { %v552_v10 = vmul.f32 %v1314_v50, %v544_v6  ;;  %v516_v11 = vmul.f32 %v1015_v0, %v515_v7 }
  0xd6   : > { %557 = vadd.xlane.f32.xlu0 %v552_v10  ;;  %v517_v14 = vadd.f32 %v1015_v0, %v516_v11  ;;  %v376_v10 = vld [vmem:[%s1288_s15 + $0x8] sm:$0xff]  }
  0xd7   : > { %v1019_v15 = vpop.eup %1018  ;;  %v644_v11 = vunpack.c.h.bf16 %v376_v10  ;;  %v643_v12 = vunpack.c.l.bf16 %v376_v10 }
  0xd8   : > { %v521_v18 = vsel %vm520_vm11, %v1015_v0, %v517_v14  ;;  %v529_v19 = vmul.f32 %v1019_v15, %v482_v1  ;;  %vm534_vm13 = vweird.f32 %v1019_v15  ;;  %v1021_v30 = vpop.eup %1020 }
  0xd9   : > { %v526_v20 = vsel %vm523_vm12, %v525_v17, %v521_v18  ;;  %vm535_vm15 = vmor %vm533_vm14, %vm534_vm13 }
  0xda   : > { %v545_v21 = vmul.f32 %v1017_v13, %v526_v20  ;;  %v530_v22 = vsub.f32 1.0, %v529_v19  ;;  %v375_v19 = vld [vmem:[%s1288_s15] sm:$0xff]  }
  0xdc   : > { %v553_v24 = vmul.f32 %v1314_v50, %v545_v21  ;;  %v531_v26 = vmul.f32 %v1019_v15, %v530_v22  ;;  %v641_v21 = vunpack.c.l.bf16 %v375_v19  ;;  %v642_v22 = vunpack.c.h.bf16 %v375_v19 }
  0xdd   : > { %v758_v19 = vstv %s757_s21 }
  0xde   : > { %559 = vadd.xlane.f32.xlu1 %v553_v24  ;;  %v532_v28 = vadd.f32 %v1019_v15, %v531_v26 }
  0xe0   : > { %v536_v29 = vsel %vm535_vm15, %v1019_v15, %v532_v28 }
  0xe1   : > { %v541_v31 = vsel %vm538_vm1, %v540_v25, %v536_v29 }
  0xe2   : > { %v546_v32 = vmul.f32 %v1021_v30, %v541_v31 }
  0xe4   : > { %v554_v33 = vmul.f32 %v1314_v50, %v546_v32  ;;  %v1156_v50 = vmov 0  }
  0xe5   : > { %992 = vset.pattern.permute.xlu2 %v1156_v50  ;;  %994 = vset.pattern.permute.xlu1 %v1156_v50 }
  0xe6   : > { %561 = vadd.xlane.f32.xlu1 %v554_v33  ;;  %993 = vset.pattern.permute.xlu0 %v1156_v50 }
 0x141   : > { %v556_v35 = vpop.xlane.xlu0 %555 }
 0x142   : > { %v570_v43 = vperm.slane %v556_v35, %v1323_v38 }
 0x149   : > { %v558_v40 = vpop.xlane.xlu0 %557 }
 0x14a   : > { %v572_v41 = vperm.slane %v558_v40, %v1326_v39 }
 0x14c   : > { %v574_v46 = vsel %vm573_vm3, %v572_v41, %v570_v43 }
 0x151   : > { %v560_v37 = vpop.xlane.xlu1 %559 }
 0x152   : > { %v575_v44 = vperm.slane %v560_v37, %v1323_v38 }
 0x159   : > { %v562_v42 = vpop.xlane.xlu1 %561 }
 0x15a   : > { %v576_v45 = vperm.slane %v562_v42, %v1326_v39 }
 0x15c   : > { %v577_v47 = vsel %vm573_vm3, %v576_v45, %v575_v44 }
 0x15d   : > { %v579_v48 = vsel %vm578_vm4, %v577_v47, %v574_v46  ;;  %v671_v47 = vld [vmem:[#allocation4] sm:$0x3] }
 0x15e   : > { %v582_v49 = vsel %vm581_vm5, %v579_v48, -inf }
 0x15f   : > { %583 = vmax.xlane.f32.xlu2 %v582_v49 }
 0x1d2   : > { %v584_v53 = vpop.xlane.xlu2 %583 }
 0x1d3   : > { %v585_v54 = vmax.f32 %v563_v52, %v584_v53 }
 0x1d5   : > { %v586_v55 = vsub.f32 %v563_v52, %v585_v54  ;;  %685 = vst.msk [vmem:[#allocation2] sm:$0x3] %vm369_vm2, %v585_v54  ;;  %591 = vperm.xlu2 %992, %v585_v54   ;;  %v609_v54 = vld [vmem:[#allocation3] sm:$0x3] }
 0x1d7   : > { %v587_v2 = vmul.f32 1.442695, %v586_v55 }
 0x22f   : > { %v592_v56 = vpop.permute.xlu2 %591 }
 0x230   : > { %v593_v57 = vperm.slane %v592_v56, 0  ;;  %v594_v58 = vperm.slane %v592_v56, 1 }
 0x232   : > { %v597_v59 = vsub.f32 %v556_v35, %v593_v57  ;;  %v598_v60 = vsub.f32 %v558_v40, %v593_v57  ;;  %v599_v61 = vsub.f32 %v560_v37, %v594_v58  ;;  %v600_v1 = vsub.f32 %v562_v42, %v594_v58 }
 0x234   : > { %v601_v62 = vmul.f32 1.442695, %v597_v59  ;;  %v603_v63 = vmul.f32 1.442695, %v598_v60  ;;  %v605_v0 = vmul.f32 1.442695, %v599_v61 }
 0x235   : > { %v607_v4 = vmul.f32 1.442695, %v600_v1  ;;  %v916_v59 = vld [vmem:[%s1396_s4 + $0x8] sm:$0xff]  ;;  %v915_v60 = vld [vmem:[%s1396_s4] sm:$0xff] }
 0x236   : > { %1022 = vpow2.f32 %v601_v62  ;;  %741 = vmatpush.bf16.msra.mxu2 %v916_v59 }
 0x237   : > { %1024 = vpow2.f32 %v603_v63 }
 0x238   : > { %1026 = vpow2.f32 %v605_v0 }
 0x239   : > { %1028 = vpow2.f32 %v587_v2 }
 0x23a   : > { %1030 = vpow2.f32 %v607_v4  ;;  %742 = vmatpush.bf16.msra.mxu2 %v915_v60 }
 0x23c   : > { %v1023_v3 = vpop.eup %1022 }
 0x23d   : > { %v1025_v5 = vpop.eup %1024  ;;  %616 = vperm.xlu0 %993, %v1023_v3  }
 0x23e   : > { %v1027_v6 = vpop.eup %1026  ;;  %619 = vperm.xlu1 %994, %v1025_v5  }
 0x23f   : > { %622 = vperm.xlu2 %992, %v1027_v6   ;;  %v1029_v7 = vpop.eup %1028 }
 0x240   : > { %v1031_v8 = vpop.eup %1030  ;;  %v610_v55 = vmul.f32 %v1029_v7, %v609_v54 }
 0x245   : > { %674 = vperm.xlu0 %993, %v1029_v7  }
 0x247   : > { %625 = vperm.xlu2 %992, %v1031_v8  }
 0x299   : > { %v623_v9 = vpop.permute.xlu2 %622 }
 0x29a   : > { %v651_v15 = vmul.f32 %v643_v12, %v623_v9  ;;  %v630_v29 = vperm.slane %v623_v9, %v1323_v38 }
 0x29c   : > { %v662_v17 = vsel %vm418_vm0, %v651_v15, 0.0 }
 0x2a1   : > { %v626_v13 = vpop.permute.xlu2 %625 }
 0x2a2   : > { %v652_v14 = vmul.f32 %v644_v11, %v626_v13  ;;  %v631_v23 = vperm.slane %v626_v13, %v1326_v39  ;;  %v996_v11 = vld [vmem:[%s1397_s5] ss:$0 sm:$0xff] }
 0x2a4   : > { %v663_v16 = vsel %vm418_vm0, %v652_v14, 0.0  ;;  %v632_v35 = vsel %vm573_vm3, %v631_v23, %v630_v29  ;;  %v997_v14 = vld [vmem:[%s1398_s6] ss:$0 sm:$0xff] }
 0x2a5   : > { %v664_v18 = vadd.f32 %v663_v16, %v662_v17 }
 0x2a7   : > { %v665_v20 = vrot.slane %v664_v18, 4 }
 0x2a9   : > { %v666_v26 = vadd.f32 %v665_v20, %v664_v18 }
 0x2ab   : > { %v667_v36 = vrot.slane %v666_v26, 2 }
 0x2af   : > { %v617_v24 = vpop.permute.xlu0 %616 }
 0x2b0   : > { %v620_v27 = vpop.permute.xlu1 %619  ;;  %v627_v28 = vperm.slane %v617_v24, %v1323_v38  ;;  %v649_v25 = vmul.f32 %v641_v21, %v617_v24  ;;  %v668_v38 = vadd.f32 %v667_v36, %v666_v26 }
 0x2b1   : > { %v628_v30 = vperm.slane %v620_v27, %v1326_v39  ;;  %v650_v31 = vmul.f32 %v642_v22, %v620_v27 }
 0x2b2   : > { %v653_v32 = vsel %vm418_vm0, %v649_v25, 0.0  ;;  %v669_v45 = vrot.slane %v668_v38, 1 }
 0x2b3   : > { %v654_v33 = vsel %vm418_vm0, %v650_v31, 0.0  ;;  %v629_v34 = vsel %vm573_vm3, %v628_v30, %v627_v28 }
 0x2b4   : > { %v655_v37 = vadd.f32 %v654_v33, %v653_v32  ;;  %v633_v40 = vsel %vm578_vm4, %v632_v35, %v629_v34  ;;  %v670_v50 = vadd.f32 %v669_v45, %v668_v38 }
 0x2b5   : > { %v635_v41 = vsel %vm581_vm5, %v633_v40, 0.0 }
 0x2b6   : > { %v656_v42 = vrot.slane %v655_v37, 4  ;;  %636 = vadd.xlane.f32.xlu1 %v635_v41 }
 0x2b7   : > { %v675_v48 = vpop.permute.xlu0 %674 }
 0x2b8   : > { %v657_v43 = vadd.f32 %v656_v42, %v655_v37  ;;  %v677_v51 = vmul.f32 %v675_v48, %v671_v47 }
 0x2ba   : > { %v658_v39 = vrot.slane %v657_v43, 2 }
 0x2bc   : > { %v659_v44 = vadd.f32 %v658_v39, %v657_v43 }
 0x2be   : > { %v660_v46 = vrot.slane %v659_v44, 1 }
 0x2c0   : > { %v661_v49 = vadd.f32 %v660_v46, %v659_v44 }
 0x2c2   : > { %v680_v52 = vsel %vm578_vm4, %v670_v50, %v661_v49 }
 0x2c3   : > { %v682_v53 = vadd.f32 %v680_v52, %v677_v51 }
 0x2c5   : > { %684 = vst.msk [vmem:[#allocation4] sm:$0x3] %vm372_vm6, %v682_v53 }
 0x2cc   : > { %v689_v7 = vld [vmem:[#allocation4] sm:$0x3] }
 0x329   : > { %v637_v56 = vpop.xlane.xlu1 %636 }
 0x32a   : > { %v638_v57 = vadd.f32 %v637_v56, %v610_v55 }
 0x32c   : > { %640 = vst.msk [vmem:[#allocation3] sm:$0x3] %vm369_vm2, %v638_v57 }
 0x333   : > { %v690_v58 = vld [vmem:[#allocation3] sm:$0x3] }
 0x334   : > { %693 = vperm.xlu2 %992, %v690_v58  }
 0x38e   : > { %v694_v61 = vpop.permute.xlu2 %693 }
 0x38f   : > { %1032 = vrcp.f32 %v694_v61  ;;  %v707_v1 = vand.u32 2147483648, %v694_v61  ;;  %v705_v3 = vand.u32 2147483647, %v694_v61  ;;  %vm701_vm8 = vweird.f32 %v694_v61 }
 0x391   : > { %v708_v5 = vor.u32 1.1754944e-38, %v707_v1  ;;  %vm706_vm10 = vcmp.eq.f32.partialorder %v705_v3, 8.507059e+37 }
 0x395   : > { %v1033_v62 = vpop.eup %1032 }
 0x396   : > { %v697_v63 = vmul.f32 %v1033_v62, %v694_v61  ;;  %vm702_vm7 = vweird.f32 %v1033_v62 }
 0x397   : > { %vm703_vm9 = vmor %vm701_vm8, %vm702_vm7 }
 0x398   : > { %v698_v0 = vsub.f32 1.0, %v697_v63 }
 0x39a   : > { %v699_v2 = vmul.f32 %v1033_v62, %v698_v0 }
 0x39c   : > { %v700_v4 = vadd.f32 %v1033_v62, %v699_v2 }
 0x39e   : > { %v704_v6 = vsel %vm703_vm9, %v1033_v62, %v700_v4 }
 0x39f   : > { %v709_v8 = vsel %vm706_vm10, %v708_v5, %v704_v6 }
 0x3a0   : > { %v710_v9 = vmul.f32 %v709_v8, %v689_v7 }
 0x3a2   : > { %v711_v10 = vpack.c.bf16 %v710_v9, %v710_v9 }
 0x3a4   : > { %904 = vmatmul.msk.bf16.vlgmr.msra.gmra.mxu2 %vm418_vm0, %v711_v10  ;;  %vm765_vm0 = vcmask 0  }
 0x427   : > { %v744_v12 = vpop.f32.mrf.mxu2 }
 0x428   : > { %v745_v13 = vadd.f32 %v996_v11, %v744_v12 }
 0x42a   : > { %v748_v15 = vmax.f32 %v745_v13, 0.0 }
 0x42c   : > { %v753_v16 = vmul.f32 %v997_v14, %v748_v15 }
 0x42e   : > { %v754_v17 = vsel %vm581_vm5, %v753_v16, 0.0 }
 0x42f   : > { %v746_v18 = vpop.f32.mrf.mxu2  ;;  %755 = vadd.xlane.f32.xlu2 %v754_v17 }
 0x4a2   : > { %v756_v20 = vpop.xlane.xlu2 %755 }
 0x4a3   : > { %v759_v21 = vadd.f32 %v758_v19, %v756_v20 }
 0x4a5   : > { %v761_v22 = vperm.slane %v759_v21, 0  ;;  %v762_v23 = vperm.slane %v759_v21, 1 }
 0x4a7   : > { %766 = vst.msk [vmem:[%s362_s29] sm:$0x1] %vm765_vm0, %v761_v22 }
 0x4a8   : > { %767 = vst.msk [vmem:[%s362_s29 + $0x1] sm:$0x1] %vm765_vm0, %v762_v23 }
 0x4a9 PF: > { %s23_s12 = sadd.s32 1, %s1148_s12   ;;  %s1409_s15 = sld [smem:[#allocation12_spill]] }
 0x4aa   : > { %p20_p2 = scmp.ge.s32.totalorder %s23_s12, 4   ;;  %s1410_s29 = smov %s1132_s30 }
 0x4ab   : > { %s1411_s30 = smov %s1136_s9  ;;  %s1412_s9 = smov %s1276_s7 }
 0x4ac   : > { %s1413_s10 = smov %s1144_s11  ;;  %22 = sbr.rel (!%p20_p2) target bundleno = 8 (0x8), region = 104 }
 0x4af   : > { %s1414_s11 = smov %s1409_s15 }
 0x4b1   :  { %788 = vsyncpa [#allocation7], 1 }
 0x4b2   :  { %790 = vsyncpa [#allocation7 + $0x1], 1 }
 0x4b3   :  { %791 = vsyncpa [#allocation9], 1 }

</bundles_post_ra>
